<compile_context>
chip_gen: v6e
topology: v6e:2x2x1
jax: 0.10.0
libtpu: 0.0.40
codegen_flags: <defaults>
</compile_context>

<pallas_src>
import functools
import math

import jax
import jax.numpy as jnp
from jax.experimental import pallas as pl
from jax.experimental.pallas import tpu as pltpu


def _spattrnn_kernel(x_sp_ref, x_tm_ref, adj_bd_ref, wx_slab_ref, w_slab_ref,
                     out_ref, axw_scr,
                     *, B, T, N, D, Hd, Gp, idx, layout):
    f32 = jnp.float32
    G4 = 4 * Hd

    def wget(name):
        # Small static-offset window load straight from the packed VMEM slab
        # (avoids materializing the whole slab in vregs).
        r0, nr, nc = layout[name]
        return w_slab_ref[r0:r0 + nr, 0:nc]

    # ---------------- hoisted, h-independent projections (off the serial chains) ----
    # Spatial branch: block-diagonal graph mix for the whole batch, then a single
    # (B*N, T*D) @ (T*D, T*4H) input projection covering ALL time steps at once.
    mixed = jnp.dot(adj_bd_ref[...], x_sp_ref[...], preferred_element_type=f32)  # (B*N, T*D)
    axw = jnp.dot(mixed, wx_slab_ref[0:T * D, :], preferred_element_type=f32)    # (B*N, T*4H)
    # + time-tiled gate bias (one add), staged in VMEM scratch to bound vreg live ranges.
    axw_scr[...] = axw + wx_slab_ref[T * D:T * D + 1, :]

    # Temporal branch: GRU input projection for all steps at once (time-major rows).
    gi_all = (jnp.dot(x_tm_ref[...], wget("wih"), preferred_element_type=f32)
              + wget("bih"))                                                      # (T*B, Gp)

    wh = wget("wh")                                      # (Hd, 4H)
    whh = wget("whh")                                    # (Hd, Gp)
    bhh_b = jnp.broadcast_to(wget("bhh"), (B, Gp))       # hoisted loop-invariant broadcast

    h_sp = jnp.zeros((B * N, Hd), f32)
    c_sp = jnp.zeros((B * N, Hd), f32)
    h_tm = jnp.zeros((B, Hd), f32)

    # ---------------- fused, fully unrolled recurrences ----------------------------
    # The graph-LSTM and GRU chains are independent until the head, so interleaving
    # them lets the scheduler hide each chain's MXU/EUP latency behind the other.
    for t in range(T):
        gates = axw_scr[:, t * G4:(t + 1) * G4] + jnp.dot(
            h_sp, wh, preferred_element_type=f32)                    # (B*N, 4H)
        gh = jnp.dot(h_tm, whh, preferred_element_type=f32) + bhh_b  # (B, Gp)
        gi = gi_all[t * B:(t + 1) * B, :]                            # (B, Gp)

        # graph-LSTM gate math: full 128-lane activations, then lane extracts (i,f,g,o)
        sg = jax.nn.sigmoid(gates)
        tg = jnp.tanh(gates)
        c_sp = sg[:, Hd:2 * Hd] * c_sp + sg[:, 0:Hd] * tg[:, 2 * Hd:3 * Hd]
        h_sp = sg[:, 3 * Hd:4 * Hd] * jnp.tanh(c_sp)

        # GRU gate math (PyTorch order r, z, n)
        s_rz = jax.nn.sigmoid(gi + gh)
        r = s_rz[:, 0:Hd]
        z = s_rz[:, Hd:2 * Hd]
        n = jnp.tanh(gi[:, 2 * Hd:3 * Hd] + r * gh[:, 2 * Hd:3 * Hd])
        h_tm = (1.0 - z) * n + z * h_tm

    # ---------------- head ----------------------------------------------------------
    # fc_5 only on the target-station rows (static reshape + index, no concat).
    h_tgt = h_sp.reshape(B, N, Hd)[:, idx, :]                        # (B, Hd)
    x_spatial = (jnp.dot(jnp.maximum(h_tgt, 0.0), wget("w5"),
                         preferred_element_type=f32) + wget("b5"))   # (B, Hd)
    # fc_2(concat([h_temporal, x_spatial])) as two matmuls (no lane-axis concatenate).
    h2 = jnp.maximum(
        jnp.dot(h_tm, wget("w2t"), preferred_element_type=f32)
        + jnp.dot(x_spatial, wget("w2s"), preferred_element_type=f32)
        + wget("b2"), 0.0)
    h3 = jnp.maximum(jnp.dot(h2, wget("w3"), preferred_element_type=f32)
                     + wget("b3"), 0.0)
    out = jnp.dot(h3, wget("w4"), preferred_element_type=f32) + wget("b4")
    out_ref[...] = out.astype(out_ref.dtype)


def prepare_params(params, *, T):
    """Pack parameters into two kernel slabs + a static layout (row offsets)."""
    f32 = jnp.float32
    Hd = params["wh"].shape[0]
    out_len = params["w4"].shape[1]
    G4 = 4 * Hd
    G = 3 * Hd
    Gp = ((G + 127) // 128) * 128
    LANES = max(128, G4, Gp)

    # Slab 1: block-diagonal (per-time-step) input weight of the graph-LSTM cell plus
    # the time-tiled gate bias as an extra aligned row.
    wx_bd = jnp.kron(jnp.eye(T, dtype=f32), params["wx"].astype(f32))   # (T*D, T*4H)
    bg_t = jnp.tile(params["bg"].astype(f32), (1, T))                   # (1,   T*4H)
    wx_slab = jnp.concatenate([wx_bd, bg_t], axis=0)
    wx_slab = jnp.pad(wx_slab, ((0, (-wx_slab.shape[0]) % 8), (0, 0)))

    # Slab 2: everything else, 128-lane wide, 8-row-aligned static offsets.
    def pad_gate(w):  # pad GRU gate width 3H -> Gp (zero lanes never read)
        return w if Gp == G else jnp.pad(w, [(0, 0)] * (w.ndim - 1) + [(0, Gp - G)])

    entries = [
        ("wh",  params["wh"]),
        ("wih", pad_gate(params["wih"])),
        ("whh", pad_gate(params["whh"])),
        ("bih", pad_gate(params["bih"])),
        ("bhh", pad_gate(params["bhh"])),
        ("w5",  params["w5"]),
        ("b5",  params["b5"]),
        ("w2t", params["w2"][:Hd, :]),   # multiplies the temporal (GRU) half
        ("w2s", params["w2"][Hd:, :]),   # multiplies the spatial half
        ("b2",  params["b2"]),
        ("w3",  params["w3"]),
        ("b3",  params["b3"]),
        ("w4",  params["w4"]),
        ("b4",  params["b4"]),
    ]
    layout = {}
    blocks = []
    r = 0
    for name, w in entries:
        w = w.astype(f32)
        nr, nc = w.shape
        layout[name] = (r, nr, nc)
        nr_pad = ((nr + 7) // 8) * 8
        blocks.append(jnp.pad(w, ((0, nr_pad - nr), (0, LANES - nc))))
        r += nr_pad
    w_slab = jnp.concatenate(blocks, axis=0)

    slabs = {"wx_slab": wx_slab, "w_slab": w_slab}
    meta = {"layout": layout, "Hd": Hd, "Gp": Gp, "out_len": out_len}
    return slabs, meta


def spattrnn_forward(x, adj_last, slabs, *, meta, idx):
    """x: (B,T,N,D) f32; adj_last: (B,N,N) f32 (already adj[:, -1]); idx: python int."""
    B, T, N, D = x.shape
    Hd, Gp = meta["Hd"], meta["Gp"]
    out_len = meta["out_len"]
    idx = int(idx)

    # ---- wrapper-side prep (cheap XLA ops, fused under jit) ----
    # rows ordered (b, n), columns grouped (t, d):
    x_sp = jnp.transpose(x, (0, 2, 1, 3)).reshape(B * N, T * D)
    # target-station series, time-major rows (t, b):
    x_tm = jnp.transpose(x[:, :, idx, :], (1, 0, 2)).reshape(T * B, D)
    # block-diagonal adjacency -> whole batch shares one graph-mix matmul:
    eye_b = jnp.eye(B, dtype=x.dtype)
    adj_bd = (eye_b[:, None, :, None] * adj_last[:, :, None, :]).reshape(B * N, B * N)

    kernel = functools.partial(_spattrnn_kernel, B=B, T=T, N=N, D=D,
                               Hd=Hd, Gp=Gp, idx=idx, layout=meta["layout"])

    # Whole problem in one grid step: working set (~0.5 MiB) fits trivially in VMEM on
    # v5e/v6e/v7x, so no BlockSpec tiling / pipelining is introduced.
    return pl.pallas_call(
        kernel,
        out_shape=jax.ShapeDtypeStruct((B, out_len), jnp.float32),
        scratch_shapes=[pltpu.VMEM((B * N, T * 4 * Hd), jnp.float32)],
    )(x_sp, x_tm, adj_bd, slabs["wx_slab"], slabs["w_slab"])


def init_params(key, D, Hd, H2, out_len):
    ks = jax.random.split(key, 15)

    def u(k, shape, fan_in):
        s = 1.0 / math.sqrt(fan_in)
        return jax.random.uniform(k, shape, jnp.float32, -s, s)

    return {
        # TemporalGCN graph-LSTM cell
        "wx": u(ks[0], (D, 4 * Hd), D),
        "wh": u(ks[1], (Hd, 4 * Hd), Hd),
        "bg": u(ks[2], (1, 4 * Hd), Hd),
        # fc_5
        "w5": u(ks[3], (Hd, Hd), Hd),
        "b5": u(ks[4], (1, Hd), Hd),
        # GRU (PyTorch gate order r,z,n; stored transposed)
        "wih": u(ks[5], (D, 3 * Hd), Hd),
        "whh": u(ks[6], (Hd, 3 * Hd), Hd),
        "bih": u(ks[7], (1, 3 * Hd), Hd),
        "bhh": u(ks[8], (1, 3 * Hd), Hd),
        # fc_2, fc_3, fc_4
        "w2": u(ks[9], (2 * Hd, Hd), 2 * Hd),
        "b2": u(ks[10], (1, Hd), 2 * Hd),
        "w3": u(ks[11], (Hd, H2), Hd),
        "b3": u(ks[12], (1, H2), Hd),
        "w4": u(ks[13], (H2, out_len), H2),
        "b4": u(ks[14], (1, out_len), H2),
    }


def reference_forward(x, adj, idx, p):
    """Pure-JAX f32 mirror of the PyTorch forward (for correctness checking)."""
    B, T, N, D = x.shape
    Hd = p["wh"].shape[0]
    h = jnp.zeros((B, N, Hd), jnp.float32)
    c = jnp.zeros((B, N, Hd), jnp.float32)
    for t in range(T):
        z = jnp.einsum("bij,bjd->bid", adj, x[:, t])
        gates = z @ p["wx"] + h @ p["wh"] + p["bg"]
        i = jax.nn.sigmoid(gates[..., 0:Hd])
        f = jax.nn.sigmoid(gates[..., Hd:2 * Hd])
        g = jnp.tanh(gates[..., 2 * Hd:3 * Hd])
        o = jax.nn.sigmoid(gates[..., 3 * Hd:4 * Hd])
        c = f * c + i * g
        h = o * jnp.tanh(c)
    xs = jax.nn.relu(h) @ p["w5"] + p["b5"]
    x_spatial = xs[:, idx, :]
    xt_seq = x[:, :, idx, :]
    hT = jnp.zeros((B, Hd), jnp.float32)
    for t in range(T):
        gi = xt_seq[:, t] @ p["wih"] + p["bih"]
        gh = hT @ p["whh"] + p["bhh"]
        r = jax.nn.sigmoid(gi[:, 0:Hd] + gh[:, 0:Hd])
        z = jax.nn.sigmoid(gi[:, Hd:2 * Hd] + gh[:, Hd:2 * Hd])
        n = jnp.tanh(gi[:, 2 * Hd:3 * Hd] + r * gh[:, 2 * Hd:3 * Hd])
        hT = (1.0 - z) * n + z * hT
    hc = jnp.concatenate([hT, x_spatial], axis=-1)
    h2 = jax.nn.relu(hc @ p["w2"] + p["b2"])
    h3 = jax.nn.relu(h2 @ p["w3"] + p["b3"])
    return h3 @ p["w4"] + p["b4"]


if __name__ == "__main__":
    # config: batch_size=2, input_len=8, num_stations=16, input_dim=4,
    #         hidden_dim=32, hidden_dim_2=32, output_len=8, rnn_type='gru'
    B, T, N, D = 2, 8, 16, 4
    Hd, H2, OUT = 32, 32, 8
    target_station_idx = 3

    key = jax.random.PRNGKey(0)
    kx, ka, kp = jax.random.split(key, 3)
    x = jax.random.normal(kx, (B, T, N, D), jnp.float32)
    adj_full = jax.random.uniform(ka, (B, T, N, N), jnp.float32)
    adj_full = adj_full / jnp.sum(adj_full, axis=-1, keepdims=True)  # row-normalized adjacency
    adj_last = adj_full[:, -1, :, :]  # matches adj[:, -1, :, :].squeeze(1)

    params = init_params(kp, D, Hd, H2, OUT)
    slabs, meta = prepare_params(params, T=T)

    fwd = jax.jit(functools.partial(spattrnn_forward, meta=meta, idx=target_station_idx))
    out = jax.block_until_ready(fwd(x, adj_last, slabs))

    ref = reference_forward(x, adj_last, target_station_idx, params)
    assert out.shape == (B, OUT), out.shape
    assert jnp.allclose(out, ref, rtol=1e-3, atol=1e-3), (out, ref)

    print("KERNEL_OK")
</pallas_src>

<mosaic_0001>
module attributes {stable_mosaic.version = 11 : i64} {
  func.func @_spattrnn_kernel(%arg0: memref<32x32xf32, #tpu.memory_space<vmem>>, %arg1: memref<16x4xf32, #tpu.memory_space<vmem>>, %arg2: memref<32x32xf32, #tpu.memory_space<vmem>>, %arg3: memref<40x1024xf32, #tpu.memory_space<vmem>>, %arg4: memref<280x128xf32, #tpu.memory_space<vmem>>, %arg5: memref<2x8xf32, #tpu.memory_space<vmem>>, %arg6: memref<32x1024xf32, #tpu.memory_space<vmem>>) attributes {dimension_semantics = [], scalar_prefetch = 0 : i64, scratch_operands = 1 : i64, tpu.core_type = #tpu.core_type<tc>} {
    %c0 = arith.constant 0 : index
    %c0_0 = arith.constant 0 : index
    %0 = vector.load %arg2[%c0, %c0_0] : memref<32x32xf32, #tpu.memory_space<vmem>>, vector<32x32xf32>
    %c0_1 = arith.constant 0 : index
    %c0_2 = arith.constant 0 : index
    %1 = vector.load %arg0[%c0_1, %c0_2] : memref<32x32xf32, #tpu.memory_space<vmem>>, vector<32x32xf32>
    %cst = arith.constant dense<0.000000e+00> : vector<32x32xf32>
    %2 = tpu.matmul %0, %1, %cst {dimension_numbers = #tpu.dot_dimension_numbers<[1], [0], [0], [1], [0, 0, 1, 1], [], []>} : vector<32x32xf32>, vector<32x32xf32>, vector<32x32xf32> -> vector<32x32xf32>
    %c0_3 = arith.constant 0 : index
    %c0_4 = arith.constant 0 : index
    %3 = vector.load %arg3[%c0_3, %c0_4] : memref<40x1024xf32, #tpu.memory_space<vmem>>, vector<32x1024xf32>
    %cst_5 = arith.constant dense<0.000000e+00> : vector<32x1024xf32>
    %4 = tpu.matmul %2, %3, %cst_5 {dimension_numbers = #tpu.dot_dimension_numbers<[1], [0], [0], [1], [0, 0, 1, 1], [], []>} : vector<32x32xf32>, vector<32x1024xf32>, vector<32x1024xf32> -> vector<32x1024xf32>
    %c32 = arith.constant 32 : index
    %c0_6 = arith.constant 0 : index
    %5 = vector.load %arg3[%c32, %c0_6] : memref<40x1024xf32, #tpu.memory_space<vmem>>, vector<1x1024xf32>
    %6 = vector.broadcast %5 : vector<1x1024xf32> to vector<32x1024xf32>
    %7 = arith.addf %4, %6 : vector<32x1024xf32>
    %c0_7 = arith.constant 0 : index
    %c0_8 = arith.constant 0 : index
    %8 = vector.load %arg6[%c0_7, %c0_8] : memref<32x1024xf32, #tpu.memory_space<vmem>>, vector<32x1024xf32>
    tpu.vector_store %arg6[%c0_7, %c0_8], %7 {strides = array<i32>} : memref<32x1024xf32, #tpu.memory_space<vmem>>, vector<32x1024xf32>,
    %c0_9 = arith.constant 0 : index
    %c0_10 = arith.constant 0 : index
    %9 = vector.load %arg1[%c0_9, %c0_10] : memref<16x4xf32, #tpu.memory_space<vmem>>, vector<16x4xf32>
    %c32_11 = arith.constant 32 : index
    %c0_12 = arith.constant 0 : index
    %10 = vector.load %arg4[%c32_11, %c0_12] : memref<280x128xf32, #tpu.memory_space<vmem>>, vector<4x128xf32>
    %cst_13 = arith.constant dense<0.000000e+00> : vector<16x128xf32>
    %11 = tpu.matmul %9, %10, %cst_13 {dimension_numbers = #tpu.dot_dimension_numbers<[1], [0], [0], [1], [0, 0, 1, 1], [], []>} : vector<16x4xf32>, vector<4x128xf32>, vector<16x128xf32> -> vector<16x128xf32>
    %c72 = arith.constant 72 : index
    %c0_14 = arith.constant 0 : index
    %12 = vector.load %arg4[%c72, %c0_14] : memref<280x128xf32, #tpu.memory_space<vmem>>, vector<1x128xf32>
    %13 = vector.broadcast %12 : vector<1x128xf32> to vector<16x128xf32>
    %14 = arith.addf %11, %13 : vector<16x128xf32>
    %c0_15 = arith.constant 0 : index
    %c0_16 = arith.constant 0 : index
    %15 = vector.load %arg4[%c0_15, %c0_16] : memref<280x128xf32, #tpu.memory_space<vmem>>, vector<32x128xf32>
    %c40 = arith.constant 40 : index
    %c0_17 = arith.constant 0 : index
    %16 = vector.load %arg4[%c40, %c0_17] : memref<280x128xf32, #tpu.memory_space<vmem>>, vector<32x128xf32>
    %c80 = arith.constant 80 : index
    %c0_18 = arith.constant 0 : index
    %17 = vector.load %arg4[%c80, %c0_18] : memref<280x128xf32, #tpu.memory_space<vmem>>, vector<1x128xf32>
    %18 = vector.shape_cast %17 : vector<1x128xf32> to vector<1x128xf32>
    %19 = vector.broadcast %18 : vector<1x128xf32> to vector<2x128xf32>
    %cst_19 = arith.constant 0.000000e+00 : f32
    %20 = vector.broadcast %cst_19 : f32 to vector<32x32xf32>
    %cst_20 = arith.constant 0.000000e+00 : f32
    %21 = vector.broadcast %cst_20 : f32 to vector<32x32xf32>
    %cst_21 = arith.constant 0.000000e+00 : f32
    %22 = vector.broadcast %cst_21 : f32 to vector<2x32xf32>
    %c0_22 = arith.constant 0 : index
    %c0_23 = arith.constant 0 : index
    %23 = vector.load %arg6[%c0_22, %c0_23] : memref<32x1024xf32, #tpu.memory_space<vmem>>, vector<32x128xf32>
    %cst_24 = arith.constant dense<0.000000e+00> : vector<32x128xf32>
    %24 = tpu.matmul %20, %15, %cst_24 {dimension_numbers = #tpu.dot_dimension_numbers<[1], [0], [0], [1], [0, 0, 1, 1], [], []>} : vector<32x32xf32>, vector<32x128xf32>, vector<32x128xf32> -> vector<32x128xf32>
    %25 = arith.addf %23, %24 : vector<32x128xf32>
    %cst_25 = arith.constant dense<0.000000e+00> : vector<2x128xf32>
    %26 = tpu.matmul %22, %16, %cst_25 {dimension_numbers = #tpu.dot_dimension_numbers<[1], [0], [0], [1], [0, 0, 1, 1], [], []>} : vector<2x32xf32>, vector<32x128xf32>, vector<2x128xf32> -> vector<2x128xf32>
    %27 = arith.addf %26, %19 : vector<2x128xf32>
    %28 = vector.extract_strided_slice %14 {offsets = [0, 0], sizes = [2, 128], strides = [1, 1]} : vector<16x128xf32> to vector<2x128xf32>
    %29 = arith.negf %25 : vector<32x128xf32>
    %30 = math.exp %29 : vector<32x128xf32>
    %cst_26 = arith.constant 1.000000e+00 : f32
    %31 = vector.broadcast %cst_26 : f32 to vector<32x128xf32>
    %32 = arith.addf %31, %30 : vector<32x128xf32>
    %33 = arith.divf %31, %32 : vector<32x128xf32>
    %34 = math.tanh %25 : vector<32x128xf32>
    %35 = vector.extract_strided_slice %33 {offsets = [0, 32], sizes = [32, 32], strides = [1, 1]} : vector<32x128xf32> to vector<32x32xf32>
    %36 = arith.mulf %35, %21 : vector<32x32xf32>
    %37 = vector.extract_strided_slice %33 {offsets = [0, 0], sizes = [32, 32], strides = [1, 1]} : vector<32x128xf32> to vector<32x32xf32>
    %38 = vector.extract_strided_slice %34 {offsets = [0, 64], sizes = [32, 32], strides = [1, 1]} : vector<32x128xf32> to vector<32x32xf32>
    %39 = arith.mulf %37, %38 : vector<32x32xf32>
    %40 = arith.addf %36, %39 : vector<32x32xf32>
    %41 = vector.extract_strided_slice %33 {offsets = [0, 96], sizes = [32, 32], strides = [1, 1]} : vector<32x128xf32> to vector<32x32xf32>
    %42 = math.tanh %40 : vector<32x32xf32>
    %43 = arith.mulf %41, %42 : vector<32x32xf32>
    %44 = arith.addf %28, %27 : vector<2x128xf32>
    %45 = arith.negf %44 : vector<2x128xf32>
    %46 = math.exp %45 : vector<2x128xf32>
    %cst_27 = arith.constant 1.000000e+00 : f32
    %47 = vector.broadcast %cst_27 : f32 to vector<2x128xf32>
    %48 = arith.addf %47, %46 : vector<2x128xf32>
    %49 = arith.divf %47, %48 : vector<2x128xf32>
    %50 = vector.extract_strided_slice %49 {offsets = [0, 0], sizes = [2, 32], strides = [1, 1]} : vector<2x128xf32> to vector<2x32xf32>
    %51 = vector.extract_strided_slice %49 {offsets = [0, 32], sizes = [2, 32], strides = [1, 1]} : vector<2x128xf32> to vector<2x32xf32>
    %52 = vector.extract_strided_slice %28 {offsets = [0, 64], sizes = [2, 32], strides = [1, 1]} : vector<2x128xf32> to vector<2x32xf32>
    %53 = vector.extract_strided_slice %27 {offsets = [0, 64], sizes = [2, 32], strides = [1, 1]} : vector<2x128xf32> to vector<2x32xf32>
    %54 = arith.mulf %50, %53 : vector<2x32xf32>
    %55 = arith.addf %52, %54 : vector<2x32xf32>
    %56 = math.tanh %55 : vector<2x32xf32>
    %cst_28 = arith.constant 1.000000e+00 : f32
    %57 = vector.broadcast %cst_28 : f32 to vector<2x32xf32>
    %58 = arith.subf %57, %51 : vector<2x32xf32>
    %59 = arith.mulf %58, %56 : vector<2x32xf32>
    %60 = arith.mulf %51, %22 : vector<2x32xf32>
    %61 = arith.addf %59, %60 : vector<2x32xf32>
    %c0_29 = arith.constant 0 : index
    %c128 = arith.constant 128 : index
    %62 = vector.load %arg6[%c0_29, %c128] : memref<32x1024xf32, #tpu.memory_space<vmem>>, vector<32x128xf32>
    %cst_30 = arith.constant dense<0.000000e+00> : vector<32x128xf32>
    %63 = tpu.matmul %43, %15, %cst_30 {dimension_numbers = #tpu.dot_dimension_numbers<[1], [0], [0], [1], [0, 0, 1, 1], [], []>} : vector<32x32xf32>, vector<32x128xf32>, vector<32x128xf32> -> vector<32x128xf32>
    %64 = arith.addf %62, %63 : vector<32x128xf32>
    %cst_31 = arith.constant dense<0.000000e+00> : vector<2x128xf32>
    %65 = tpu.matmul %61, %16, %cst_31 {dimension_numbers = #tpu.dot_dimension_numbers<[1], [0], [0], [1], [0, 0, 1, 1], [], []>} : vector<2x32xf32>, vector<32x128xf32>, vector<2x128xf32> -> vector<2x128xf32>
    %66 = arith.addf %65, %19 : vector<2x128xf32>
    %67 = vector.extract_strided_slice %14 {offsets = [2, 0], sizes = [2, 128], strides = [1, 1]} : vector<16x128xf32> to vector<2x128xf32>
    %68 = arith.negf %64 : vector<32x128xf32>
    %69 = math.exp %68 : vector<32x128xf32>
    %cst_32 = arith.constant 1.000000e+00 : f32
    %70 = vector.broadcast %cst_32 : f32 to vector<32x128xf32>
    %71 = arith.addf %70, %69 : vector<32x128xf32>
    %72 = arith.divf %70, %71 : vector<32x128xf32>
    %73 = math.tanh %64 : vector<32x128xf32>
    %74 = vector.extract_strided_slice %72 {offsets = [0, 32], sizes = [32, 32], strides = [1, 1]} : vector<32x128xf32> to vector<32x32xf32>
    %75 = arith.mulf %74, %40 : vector<32x32xf32>
    %76 = vector.extract_strided_slice %72 {offsets = [0, 0], sizes = [32, 32], strides = [1, 1]} : vector<32x128xf32> to vector<32x32xf32>
    %77 = vector.extract_strided_slice %73 {offsets = [0, 64], sizes = [32, 32], strides = [1, 1]} : vector<32x128xf32> to vector<32x32xf32>
    %78 = arith.mulf %76, %77 : vector<32x32xf32>
    %79 = arith.addf %75, %78 : vector<32x32xf32>
    %80 = vector.extract_strided_slice %72 {offsets = [0, 96], sizes = [32, 32], strides = [1, 1]} : vector<32x128xf32> to vector<32x32xf32>
    %81 = math.tanh %79 : vector<32x32xf32>
    %82 = arith.mulf %80, %81 : vector<32x32xf32>
    %83 = arith.addf %67, %66 : vector<2x128xf32>
    %84 = arith.negf %83 : vector<2x128xf32>
    %85 = math.exp %84 : vector<2x128xf32>
    %cst_33 = arith.constant 1.000000e+00 : f32
    %86 = vector.broadcast %cst_33 : f32 to vector<2x128xf32>
    %87 = arith.addf %86, %85 : vector<2x128xf32>
    %88 = arith.divf %86, %87 : vector<2x128xf32>
    %89 = vector.extract_strided_slice %88 {offsets = [0, 0], sizes = [2, 32], strides = [1, 1]} : vector<2x128xf32> to vector<2x32xf32>
    %90 = vector.extract_strided_slice %88 {offsets = [0, 32], sizes = [2, 32], strides = [1, 1]} : vector<2x128xf32> to vector<2x32xf32>
    %91 = vector.extract_strided_slice %67 {offsets = [0, 64], sizes = [2, 32], strides = [1, 1]} : vector<2x128xf32> to vector<2x32xf32>
    %92 = vector.extract_strided_slice %66 {offsets = [0, 64], sizes = [2, 32], strides = [1, 1]} : vector<2x128xf32> to vector<2x32xf32>
    %93 = arith.mulf %89, %92 : vector<2x32xf32>
    %94 = arith.addf %91, %93 : vector<2x32xf32>
    %95 = math.tanh %94 : vector<2x32xf32>
    %cst_34 = arith.constant 1.000000e+00 : f32
    %96 = vector.broadcast %cst_34 : f32 to vector<2x32xf32>
    %97 = arith.subf %96, %90 : vector<2x32xf32>
    %98 = arith.mulf %97, %95 : vector<2x32xf32>
    %99 = arith.mulf %90, %61 : vector<2x32xf32>
    %100 = arith.addf %98, %99 : vector<2x32xf32>
    %c0_35 = arith.constant 0 : index
    %c256 = arith.constant 256 : index
    %101 = vector.load %arg6[%c0_35, %c256] : memref<32x1024xf32, #tpu.memory_space<vmem>>, vector<32x128xf32>
    %cst_36 = arith.constant dense<0.000000e+00> : vector<32x128xf32>
    %102 = tpu.matmul %82, %15, %cst_36 {dimension_numbers = #tpu.dot_dimension_numbers<[1], [0], [0], [1], [0, 0, 1, 1], [], []>} : vector<32x32xf32>, vector<32x128xf32>, vector<32x128xf32> -> vector<32x128xf32>
    %103 = arith.addf %101, %102 : vector<32x128xf32>
    %cst_37 = arith.constant dense<0.000000e+00> : vector<2x128xf32>
    %104 = tpu.matmul %100, %16, %cst_37 {dimension_numbers = #tpu.dot_dimension_numbers<[1], [0], [0], [1], [0, 0, 1, 1], [], []>} : vector<2x32xf32>, vector<32x128xf32>, vector<2x128xf32> -> vector<2x128xf32>
    %105 = arith.addf %104, %19 : vector<2x128xf32>
    %106 = vector.extract_strided_slice %14 {offsets = [4, 0], sizes = [2, 128], strides = [1, 1]} : vector<16x128xf32> to vector<2x128xf32>
    %107 = arith.negf %103 : vector<32x128xf32>
    %108 = math.exp %107 : vector<32x128xf32>
    %cst_38 = arith.constant 1.000000e+00 : f32
    %109 = vector.broadcast %cst_38 : f32 to vector<32x128xf32>
    %110 = arith.addf %109, %108 : vector<32x128xf32>
    %111 = arith.divf %109, %110 : vector<32x128xf32>
    %112 = math.tanh %103 : vector<32x128xf32>
    %113 = vector.extract_strided_slice %111 {offsets = [0, 32], sizes = [32, 32], strides = [1, 1]} : vector<32x128xf32> to vector<32x32xf32>
    %114 = arith.mulf %113, %79 : vector<32x32xf32>
    %115 = vector.extract_strided_slice %111 {offsets = [0, 0], sizes = [32, 32], strides = [1, 1]} : vector<32x128xf32> to vector<32x32xf32>
    %116 = vector.extract_strided_slice %112 {offsets = [0, 64], sizes = [32, 32], strides = [1, 1]} : vector<32x128xf32> to vector<32x32xf32>
    %117 = arith.mulf %115, %116 : vector<32x32xf32>
    %118 = arith.addf %114, %117 : vector<32x32xf32>
    %119 = vector.extract_strided_slice %111 {offsets = [0, 96], sizes = [32, 32], strides = [1, 1]} : vector<32x128xf32> to vector<32x32xf32>
    %120 = math.tanh %118 : vector<32x32xf32>
    %121 = arith.mulf %119, %120 : vector<32x32xf32>
    %122 = arith.addf %106, %105 : vector<2x128xf32>
    %123 = arith.negf %122 : vector<2x128xf32>
    %124 = math.exp %123 : vector<2x128xf32>
    %cst_39 = arith.constant 1.000000e+00 : f32
    %125 = vector.broadcast %cst_39 : f32 to vector<2x128xf32>
    %126 = arith.addf %125, %124 : vector<2x128xf32>
    %127 = arith.divf %125, %126 : vector<2x128xf32>
    %128 = vector.extract_strided_slice %127 {offsets = [0, 0], sizes = [2, 32], strides = [1, 1]} : vector<2x128xf32> to vector<2x32xf32>
    %129 = vector.extract_strided_slice %127 {offsets = [0, 32], sizes = [2, 32], strides = [1, 1]} : vector<2x128xf32> to vector<2x32xf32>
    %130 = vector.extract_strided_slice %106 {offsets = [0, 64], sizes = [2, 32], strides = [1, 1]} : vector<2x128xf32> to vector<2x32xf32>
    %131 = vector.extract_strided_slice %105 {offsets = [0, 64], sizes = [2, 32], strides = [1, 1]} : vector<2x128xf32> to vector<2x32xf32>
    %132 = arith.mulf %128, %131 : vector<2x32xf32>
    %133 = arith.addf %130, %132 : vector<2x32xf32>
    %134 = math.tanh %133 : vector<2x32xf32>
    %cst_40 = arith.constant 1.000000e+00 : f32
    %135 = vector.broadcast %cst_40 : f32 to vector<2x32xf32>
    %136 = arith.subf %135, %129 : vector<2x32xf32>
    %137 = arith.mulf %136, %134 : vector<2x32xf32>
    %138 = arith.mulf %129, %100 : vector<2x32xf32>
    %139 = arith.addf %137, %138 : vector<2x32xf32>
    %c0_41 = arith.constant 0 : index
    %c384 = arith.constant 384 : index
    %140 = vector.load %arg6[%c0_41, %c384] : memref<32x1024xf32, #tpu.memory_space<vmem>>, vector<32x128xf32>
    %cst_42 = arith.constant dense<0.000000e+00> : vector<32x128xf32>
    %141 = tpu.matmul %121, %15, %cst_42 {dimension_numbers = #tpu.dot_dimension_numbers<[1], [0], [0], [1], [0, 0, 1, 1], [], []>} : vector<32x32xf32>, vector<32x128xf32>, vector<32x128xf32> -> vector<32x128xf32>
    %142 = arith.addf %140, %141 : vector<32x128xf32>
    %cst_43 = arith.constant dense<0.000000e+00> : vector<2x128xf32>
    %143 = tpu.matmul %139, %16, %cst_43 {dimension_numbers = #tpu.dot_dimension_numbers<[1], [0], [0], [1], [0, 0, 1, 1], [], []>} : vector<2x32xf32>, vector<32x128xf32>, vector<2x128xf32> -> vector<2x128xf32>
    %144 = arith.addf %143, %19 : vector<2x128xf32>
    %145 = vector.extract_strided_slice %14 {offsets = [6, 0], sizes = [2, 128], strides = [1, 1]} : vector<16x128xf32> to vector<2x128xf32>
    %146 = arith.negf %142 : vector<32x128xf32>
    %147 = math.exp %146 : vector<32x128xf32>
    %cst_44 = arith.constant 1.000000e+00 : f32
    %148 = vector.broadcast %cst_44 : f32 to vector<32x128xf32>
    %149 = arith.addf %148, %147 : vector<32x128xf32>
    %150 = arith.divf %148, %149 : vector<32x128xf32>
    %151 = math.tanh %142 : vector<32x128xf32>
    %152 = vector.extract_strided_slice %150 {offsets = [0, 32], sizes = [32, 32], strides = [1, 1]} : vector<32x128xf32> to vector<32x32xf32>
    %153 = arith.mulf %152, %118 : vector<32x32xf32>
    %154 = vector.extract_strided_slice %150 {offsets = [0, 0], sizes = [32, 32], strides = [1, 1]} : vector<32x128xf32> to vector<32x32xf32>
    %155 = vector.extract_strided_slice %151 {offsets = [0, 64], sizes = [32, 32], strides = [1, 1]} : vector<32x128xf32> to vector<32x32xf32>
    %156 = arith.mulf %154, %155 : vector<32x32xf32>
    %157 = arith.addf %153, %156 : vector<32x32xf32>
    %158 = vector.extract_strided_slice %150 {offsets = [0, 96], sizes = [32, 32], strides = [1, 1]} : vector<32x128xf32> to vector<32x32xf32>
    %159 = math.tanh %157 : vector<32x32xf32>
    %160 = arith.mulf %158, %159 : vector<32x32xf32>
    %161 = arith.addf %145, %144 : vector<2x128xf32>
    %162 = arith.negf %161 : vector<2x128xf32>
    %163 = math.exp %162 : vector<2x128xf32>
    %cst_45 = arith.constant 1.000000e+00 : f32
    %164 = vector.broadcast %cst_45 : f32 to vector<2x128xf32>
    %165 = arith.addf %164, %163 : vector<2x128xf32>
    %166 = arith.divf %164, %165 : vector<2x128xf32>
    %167 = vector.extract_strided_slice %166 {offsets = [0, 0], sizes = [2, 32], strides = [1, 1]} : vector<2x128xf32> to vector<2x32xf32>
    %168 = vector.extract_strided_slice %166 {offsets = [0, 32], sizes = [2, 32], strides = [1, 1]} : vector<2x128xf32> to vector<2x32xf32>
    %169 = vector.extract_strided_slice %145 {offsets = [0, 64], sizes = [2, 32], strides = [1, 1]} : vector<2x128xf32> to vector<2x32xf32>
    %170 = vector.extract_strided_slice %144 {offsets = [0, 64], sizes = [2, 32], strides = [1, 1]} : vector<2x128xf32> to vector<2x32xf32>
    %171 = arith.mulf %167, %170 : vector<2x32xf32>
    %172 = arith.addf %169, %171 : vector<2x32xf32>
    %173 = math.tanh %172 : vector<2x32xf32>
    %cst_46 = arith.constant 1.000000e+00 : f32
    %174 = vector.broadcast %cst_46 : f32 to vector<2x32xf32>
    %175 = arith.subf %174, %168 : vector<2x32xf32>
    %176 = arith.mulf %175, %173 : vector<2x32xf32>
    %177 = arith.mulf %168, %139 : vector<2x32xf32>
    %178 = arith.addf %176, %177 : vector<2x32xf32>
    %c0_47 = arith.constant 0 : index
    %c512 = arith.constant 512 : index
    %179 = vector.load %arg6[%c0_47, %c512] : memref<32x1024xf32, #tpu.memory_space<vmem>>, vector<32x128xf32>
    %cst_48 = arith.constant dense<0.000000e+00> : vector<32x128xf32>
    %180 = tpu.matmul %160, %15, %cst_48 {dimension_numbers = #tpu.dot_dimension_numbers<[1], [0], [0], [1], [0, 0, 1, 1], [], []>} : vector<32x32xf32>, vector<32x128xf32>, vector<32x128xf32> -> vector<32x128xf32>
    %181 = arith.addf %179, %180 : vector<32x128xf32>
    %cst_49 = arith.constant dense<0.000000e+00> : vector<2x128xf32>
    %182 = tpu.matmul %178, %16, %cst_49 {dimension_numbers = #tpu.dot_dimension_numbers<[1], [0], [0], [1], [0, 0, 1, 1], [], []>} : vector<2x32xf32>, vector<32x128xf32>, vector<2x128xf32> -> vector<2x128xf32>
    %183 = arith.addf %182, %19 : vector<2x128xf32>
    %184 = vector.extract_strided_slice %14 {offsets = [8, 0], sizes = [2, 128], strides = [1, 1]} : vector<16x128xf32> to vector<2x128xf32>
    %185 = arith.negf %181 : vector<32x128xf32>
    %186 = math.exp %185 : vector<32x128xf32>
    %cst_50 = arith.constant 1.000000e+00 : f32
    %187 = vector.broadcast %cst_50 : f32 to vector<32x128xf32>
    %188 = arith.addf %187, %186 : vector<32x128xf32>
    %189 = arith.divf %187, %188 : vector<32x128xf32>
    %190 = math.tanh %181 : vector<32x128xf32>
    %191 = vector.extract_strided_slice %189 {offsets = [0, 32], sizes = [32, 32], strides = [1, 1]} : vector<32x128xf32> to vector<32x32xf32>
    %192 = arith.mulf %191, %157 : vector<32x32xf32>
    %193 = vector.extract_strided_slice %189 {offsets = [0, 0], sizes = [32, 32], strides = [1, 1]} : vector<32x128xf32> to vector<32x32xf32>
    %194 = vector.extract_strided_slice %190 {offsets = [0, 64], sizes = [32, 32], strides = [1, 1]} : vector<32x128xf32> to vector<32x32xf32>
    %195 = arith.mulf %193, %194 : vector<32x32xf32>
    %196 = arith.addf %192, %195 : vector<32x32xf32>
    %197 = vector.extract_strided_slice %189 {offsets = [0, 96], sizes = [32, 32], strides = [1, 1]} : vector<32x128xf32> to vector<32x32xf32>
    %198 = math.tanh %196 : vector<32x32xf32>
    %199 = arith.mulf %197, %198 : vector<32x32xf32>
    %200 = arith.addf %184, %183 : vector<2x128xf32>
    %201 = arith.negf %200 : vector<2x128xf32>
    %202 = math.exp %201 : vector<2x128xf32>
    %cst_51 = arith.constant 1.000000e+00 : f32
    %203 = vector.broadcast %cst_51 : f32 to vector<2x128xf32>
    %204 = arith.addf %203, %202 : vector<2x128xf32>
    %205 = arith.divf %203, %204 : vector<2x128xf32>
    %206 = vector.extract_strided_slice %205 {offsets = [0, 0], sizes = [2, 32], strides = [1, 1]} : vector<2x128xf32> to vector<2x32xf32>
    %207 = vector.extract_strided_slice %205 {offsets = [0, 32], sizes = [2, 32], strides = [1, 1]} : vector<2x128xf32> to vector<2x32xf32>
    %208 = vector.extract_strided_slice %184 {offsets = [0, 64], sizes = [2, 32], strides = [1, 1]} : vector<2x128xf32> to vector<2x32xf32>
    %209 = vector.extract_strided_slice %183 {offsets = [0, 64], sizes = [2, 32], strides = [1, 1]} : vector<2x128xf32> to vector<2x32xf32>
    %210 = arith.mulf %206, %209 : vector<2x32xf32>
    %211 = arith.addf %208, %210 : vector<2x32xf32>
    %212 = math.tanh %211 : vector<2x32xf32>
    %cst_52 = arith.constant 1.000000e+00 : f32
    %213 = vector.broadcast %cst_52 : f32 to vector<2x32xf32>
    %214 = arith.subf %213, %207 : vector<2x32xf32>
    %215 = arith.mulf %214, %212 : vector<2x32xf32>
    %216 = arith.mulf %207, %178 : vector<2x32xf32>
    %217 = arith.addf %215, %216 : vector<2x32xf32>
    %c0_53 = arith.constant 0 : index
    %c640 = arith.constant 640 : index
    %218 = vector.load %arg6[%c0_53, %c640] : memref<32x1024xf32, #tpu.memory_space<vmem>>, vector<32x128xf32>
    %cst_54 = arith.constant dense<0.000000e+00> : vector<32x128xf32>
    %219 = tpu.matmul %199, %15, %cst_54 {dimension_numbers = #tpu.dot_dimension_numbers<[1], [0], [0], [1], [0, 0, 1, 1], [], []>} : vector<32x32xf32>, vector<32x128xf32>, vector<32x128xf32> -> vector<32x128xf32>
    %220 = arith.addf %218, %219 : vector<32x128xf32>
    %cst_55 = arith.constant dense<0.000000e+00> : vector<2x128xf32>
    %221 = tpu.matmul %217, %16, %cst_55 {dimension_numbers = #tpu.dot_dimension_numbers<[1], [0], [0], [1], [0, 0, 1, 1], [], []>} : vector<2x32xf32>, vector<32x128xf32>, vector<2x128xf32> -> vector<2x128xf32>
    %222 = arith.addf %221, %19 : vector<2x128xf32>
    %223 = vector.extract_strided_slice %14 {offsets = [10, 0], sizes = [2, 128], strides = [1, 1]} : vector<16x128xf32> to vector<2x128xf32>
    %224 = arith.negf %220 : vector<32x128xf32>
    %225 = math.exp %224 : vector<32x128xf32>
    %cst_56 = arith.constant 1.000000e+00 : f32
    %226 = vector.broadcast %cst_56 : f32 to vector<32x128xf32>
    %227 = arith.addf %226, %225 : vector<32x128xf32>
    %228 = arith.divf %226, %227 : vector<32x128xf32>
    %229 = math.tanh %220 : vector<32x128xf32>
    %230 = vector.extract_strided_slice %228 {offsets = [0, 32], sizes = [32, 32], strides = [1, 1]} : vector<32x128xf32> to vector<32x32xf32>
    %231 = arith.mulf %230, %196 : vector<32x32xf32>
    %232 = vector.extract_strided_slice %228 {offsets = [0, 0], sizes = [32, 32], strides = [1, 1]} : vector<32x128xf32> to vector<32x32xf32>
    %233 = vector.extract_strided_slice %229 {offsets = [0, 64], sizes = [32, 32], strides = [1, 1]} : vector<32x128xf32> to vector<32x32xf32>
    %234 = arith.mulf %232, %233 : vector<32x32xf32>
    %235 = arith.addf %231, %234 : vector<32x32xf32>
    %236 = vector.extract_strided_slice %228 {offsets = [0, 96], sizes = [32, 32], strides = [1, 1]} : vector<32x128xf32> to vector<32x32xf32>
    %237 = math.tanh %235 : vector<32x32xf32>
    %238 = arith.mulf %236, %237 : vector<32x32xf32>
    %239 = arith.addf %223, %222 : vector<2x128xf32>
    %240 = arith.negf %239 : vector<2x128xf32>
    %241 = math.exp %240 : vector<2x128xf32>
    %cst_57 = arith.constant 1.000000e+00 : f32
    %242 = vector.broadcast %cst_57 : f32 to vector<2x128xf32>
    %243 = arith.addf %242, %241 : vector<2x128xf32>
    %244 = arith.divf %242, %243 : vector<2x128xf32>
    %245 = vector.extract_strided_slice %244 {offsets = [0, 0], sizes = [2, 32], strides = [1, 1]} : vector<2x128xf32> to vector<2x32xf32>
    %246 = vector.extract_strided_slice %244 {offsets = [0, 32], sizes = [2, 32], strides = [1, 1]} : vector<2x128xf32> to vector<2x32xf32>
    %247 = vector.extract_strided_slice %223 {offsets = [0, 64], sizes = [2, 32], strides = [1, 1]} : vector<2x128xf32> to vector<2x32xf32>
    %248 = vector.extract_strided_slice %222 {offsets = [0, 64], sizes = [2, 32], strides = [1, 1]} : vector<2x128xf32> to vector<2x32xf32>
    %249 = arith.mulf %245, %248 : vector<2x32xf32>
    %250 = arith.addf %247, %249 : vector<2x32xf32>
    %251 = math.tanh %250 : vector<2x32xf32>
    %cst_58 = arith.constant 1.000000e+00 : f32
    %252 = vector.broadcast %cst_58 : f32 to vector<2x32xf32>
    %253 = arith.subf %252, %246 : vector<2x32xf32>
    %254 = arith.mulf %253, %251 : vector<2x32xf32>
    %255 = arith.mulf %246, %217 : vector<2x32xf32>
    %256 = arith.addf %254, %255 : vector<2x32xf32>
    %c0_59 = arith.constant 0 : index
    %c768 = arith.constant 768 : index
    %257 = vector.load %arg6[%c0_59, %c768] : memref<32x1024xf32, #tpu.memory_space<vmem>>, vector<32x128xf32>
    %cst_60 = arith.constant dense<0.000000e+00> : vector<32x128xf32>
    %258 = tpu.matmul %238, %15, %cst_60 {dimension_numbers = #tpu.dot_dimension_numbers<[1], [0], [0], [1], [0, 0, 1, 1], [], []>} : vector<32x32xf32>, vector<32x128xf32>, vector<32x128xf32> -> vector<32x128xf32>
    %259 = arith.addf %257, %258 : vector<32x128xf32>
    %cst_61 = arith.constant dense<0.000000e+00> : vector<2x128xf32>
    %260 = tpu.matmul %256, %16, %cst_61 {dimension_numbers = #tpu.dot_dimension_numbers<[1], [0], [0], [1], [0, 0, 1, 1], [], []>} : vector<2x32xf32>, vector<32x128xf32>, vector<2x128xf32> -> vector<2x128xf32>
    %261 = arith.addf %260, %19 : vector<2x128xf32>
    %262 = vector.extract_strided_slice %14 {offsets = [12, 0], sizes = [2, 128], strides = [1, 1]} : vector<16x128xf32> to vector<2x128xf32>
    %263 = arith.negf %259 : vector<32x128xf32>
    %264 = math.exp %263 : vector<32x128xf32>
    %cst_62 = arith.constant 1.000000e+00 : f32
    %265 = vector.broadcast %cst_62 : f32 to vector<32x128xf32>
    %266 = arith.addf %265, %264 : vector<32x128xf32>
    %267 = arith.divf %265, %266 : vector<32x128xf32>
    %268 = math.tanh %259 : vector<32x128xf32>
    %269 = vector.extract_strided_slice %267 {offsets = [0, 32], sizes = [32, 32], strides = [1, 1]} : vector<32x128xf32> to vector<32x32xf32>
    %270 = arith.mulf %269, %235 : vector<32x32xf32>
    %271 = vector.extract_strided_slice %267 {offsets = [0, 0], sizes = [32, 32], strides = [1, 1]} : vector<32x128xf32> to vector<32x32xf32>
    %272 = vector.extract_strided_slice %268 {offsets = [0, 64], sizes = [32, 32], strides = [1, 1]} : vector<32x128xf32> to vector<32x32xf32>
    %273 = arith.mulf %271, %272 : vector<32x32xf32>
    %274 = arith.addf %270, %273 : vector<32x32xf32>
    %275 = vector.extract_strided_slice %267 {offsets = [0, 96], sizes = [32, 32], strides = [1, 1]} : vector<32x128xf32> to vector<32x32xf32>
    %276 = math.tanh %274 : vector<32x32xf32>
    %277 = arith.mulf %275, %276 : vector<32x32xf32>
    %278 = arith.addf %262, %261 : vector<2x128xf32>
    %279 = arith.negf %278 : vector<2x128xf32>
    %280 = math.exp %279 : vector<2x128xf32>
    %cst_63 = arith.constant 1.000000e+00 : f32
    %281 = vector.broadcast %cst_63 : f32 to vector<2x128xf32>
    %282 = arith.addf %281, %280 : vector<2x128xf32>
    %283 = arith.divf %281, %282 : vector<2x128xf32>
    %284 = vector.extract_strided_slice %283 {offsets = [0, 0], sizes = [2, 32], strides = [1, 1]} : vector<2x128xf32> to vector<2x32xf32>
    %285 = vector.extract_strided_slice %283 {offsets = [0, 32], sizes = [2, 32], strides = [1, 1]} : vector<2x128xf32> to vector<2x32xf32>
    %286 = vector.extract_strided_slice %262 {offsets = [0, 64], sizes = [2, 32], strides = [1, 1]} : vector<2x128xf32> to vector<2x32xf32>
    %287 = vector.extract_strided_slice %261 {offsets = [0, 64], sizes = [2, 32], strides = [1, 1]} : vector<2x128xf32> to vector<2x32xf32>
    %288 = arith.mulf %284, %287 : vector<2x32xf32>
    %289 = arith.addf %286, %288 : vector<2x32xf32>
    %290 = math.tanh %289 : vector<2x32xf32>
    %cst_64 = arith.constant 1.000000e+00 : f32
    %291 = vector.broadcast %cst_64 : f32 to vector<2x32xf32>
    %292 = arith.subf %291, %285 : vector<2x32xf32>
    %293 = arith.mulf %292, %290 : vector<2x32xf32>
    %294 = arith.mulf %285, %256 : vector<2x32xf32>
    %295 = arith.addf %293, %294 : vector<2x32xf32>
    %c0_65 = arith.constant 0 : index
    %c896 = arith.constant 896 : index
    %296 = vector.load %arg6[%c0_65, %c896] : memref<32x1024xf32, #tpu.memory_space<vmem>>, vector<32x128xf32>
    %cst_66 = arith.constant dense<0.000000e+00> : vector<32x128xf32>
    %297 = tpu.matmul %277, %15, %cst_66 {dimension_numbers = #tpu.dot_dimension_numbers<[1], [0], [0], [1], [0, 0, 1, 1], [], []>} : vector<32x32xf32>, vector<32x128xf32>, vector<32x128xf32> -> vector<32x128xf32>
    %298 = arith.addf %296, %297 : vector<32x128xf32>
    %cst_67 = arith.constant dense<0.000000e+00> : vector<2x128xf32>
    %299 = tpu.matmul %295, %16, %cst_67 {dimension_numbers = #tpu.dot_dimension_numbers<[1], [0], [0], [1], [0, 0, 1, 1], [], []>} : vector<2x32xf32>, vector<32x128xf32>, vector<2x128xf32> -> vector<2x128xf32>
    %300 = arith.addf %299, %19 : vector<2x128xf32>
    %301 = vector.extract_strided_slice %14 {offsets = [14, 0], sizes = [2, 128], strides = [1, 1]} : vector<16x128xf32> to vector<2x128xf32>
    %302 = arith.negf %298 : vector<32x128xf32>
    %303 = math.exp %302 : vector<32x128xf32>
    %cst_68 = arith.constant 1.000000e+00 : f32
    %304 = vector.broadcast %cst_68 : f32 to vector<32x128xf32>
    %305 = arith.addf %304, %303 : vector<32x128xf32>
    %306 = arith.divf %304, %305 : vector<32x128xf32>
    %307 = math.tanh %298 : vector<32x128xf32>
    %308 = vector.extract_strided_slice %306 {offsets = [0, 32], sizes = [32, 32], strides = [1, 1]} : vector<32x128xf32> to vector<32x32xf32>
    %309 = arith.mulf %308, %274 : vector<32x32xf32>
    %310 = vector.extract_strided_slice %306 {offsets = [0, 0], sizes = [32, 32], strides = [1, 1]} : vector<32x128xf32> to vector<32x32xf32>
    %311 = vector.extract_strided_slice %307 {offsets = [0, 64], sizes = [32, 32], strides = [1, 1]} : vector<32x128xf32> to vector<32x32xf32>
    %312 = arith.mulf %310, %311 : vector<32x32xf32>
    %313 = arith.addf %309, %312 : vector<32x32xf32>
    %314 = vector.extract_strided_slice %306 {offsets = [0, 96], sizes = [32, 32], strides = [1, 1]} : vector<32x128xf32> to vector<32x32xf32>
    %315 = math.tanh %313 : vector<32x32xf32>
    %316 = arith.mulf %314, %315 : vector<32x32xf32>
    %317 = arith.addf %301, %300 : vector<2x128xf32>
    %318 = arith.negf %317 : vector<2x128xf32>
    %319 = math.exp %318 : vector<2x128xf32>
    %cst_69 = arith.constant 1.000000e+00 : f32
    %320 = vector.broadcast %cst_69 : f32 to vector<2x128xf32>
    %321 = arith.addf %320, %319 : vector<2x128xf32>
    %322 = arith.divf %320, %321 : vector<2x128xf32>
    %323 = vector.extract_strided_slice %322 {offsets = [0, 0], sizes = [2, 32], strides = [1, 1]} : vector<2x128xf32> to vector<2x32xf32>
    %324 = vector.extract_strided_slice %322 {offsets = [0, 32], sizes = [2, 32], strides = [1, 1]} : vector<2x128xf32> to vector<2x32xf32>
    %325 = vector.extract_strided_slice %301 {offsets = [0, 64], sizes = [2, 32], strides = [1, 1]} : vector<2x128xf32> to vector<2x32xf32>
    %326 = vector.extract_strided_slice %300 {offsets = [0, 64], sizes = [2, 32], strides = [1, 1]} : vector<2x128xf32> to vector<2x32xf32>
    %327 = arith.mulf %323, %326 : vector<2x32xf32>
    %328 = arith.addf %325, %327 : vector<2x32xf32>
    %329 = math.tanh %328 : vector<2x32xf32>
    %cst_70 = arith.constant 1.000000e+00 : f32
    %330 = vector.broadcast %cst_70 : f32 to vector<2x32xf32>
    %331 = arith.subf %330, %324 : vector<2x32xf32>
    %332 = arith.mulf %331, %329 : vector<2x32xf32>
    %333 = arith.mulf %324, %295 : vector<2x32xf32>
    %334 = arith.addf %332, %333 : vector<2x32xf32>
    %335 = vector.shape_cast %316 : vector<32x32xf32> to vector<2x16x32xf32>
    %336 = vector.extract_strided_slice %335 {offsets = [0, 3, 0], sizes = [2, 1, 32], strides = [1, 1, 1]} : vector<2x16x32xf32> to vector<2x1x32xf32>
    %337 = vector.shape_cast %336 : vector<2x1x32xf32> to vector<2x32xf32>
    %cst_71 = arith.constant 0.000000e+00 : f32
    %338 = vector.broadcast %cst_71 : f32 to vector<2x32xf32>
    %339 = arith.maximumf %337, %338 : vector<2x32xf32>
    %c88 = arith.constant 88 : index
    %c0_72 = arith.constant 0 : index
    %340 = vector.load %arg4[%c88, %c0_72] : memref<280x128xf32, #tpu.memory_space<vmem>>, vector<32x32xf32>
    %cst_73 = arith.constant dense<0.000000e+00> : vector<2x32xf32>
    %341 = tpu.matmul %339, %340, %cst_73 {dimension_numbers = #tpu.dot_dimension_numbers<[1], [0], [0], [1], [0, 0, 1, 1], [], []>} : vector<2x32xf32>, vector<32x32xf32>, vector<2x32xf32> -> vector<2x32xf32>
    %c120 = arith.constant 120 : index
    %c0_74 = arith.constant 0 : index
    %342 = vector.load %arg4[%c120, %c0_74] : memref<280x128xf32, #tpu.memory_space<vmem>>, vector<1x32xf32>
    %343 = vector.broadcast %342 : vector<1x32xf32> to vector<2x32xf32>
    %344 = arith.addf %341, %343 : vector<2x32xf32>
    %c128_75 = arith.constant 128 : index
    %c0_76 = arith.constant 0 : index
    %345 = vector.load %arg4[%c128_75, %c0_76] : memref<280x128xf32, #tpu.memory_space<vmem>>, vector<32x32xf32>
    %cst_77 = arith.constant dense<0.000000e+00> : vector<2x32xf32>
    %346 = tpu.matmul %334, %345, %cst_77 {dimension_numbers = #tpu.dot_dimension_numbers<[1], [0], [0], [1], [0, 0, 1, 1], [], []>} : vector<2x32xf32>, vector<32x32xf32>, vector<2x32xf32> -> vector<2x32xf32>
    %c160 = arith.constant 160 : index
    %c0_78 = arith.constant 0 : index
    %347 = vector.load %arg4[%c160, %c0_78] : memref<280x128xf32, #tpu.memory_space<vmem>>, vector<32x32xf32>
    %cst_79 = arith.constant dense<0.000000e+00> : vector<2x32xf32>
    %348 = tpu.matmul %344, %347, %cst_79 {dimension_numbers = #tpu.dot_dimension_numbers<[1], [0], [0], [1], [0, 0, 1, 1], [], []>} : vector<2x32xf32>, vector<32x32xf32>, vector<2x32xf32> -> vector<2x32xf32>
    %349 = arith.addf %346, %348 : vector<2x32xf32>
    %c192 = arith.constant 192 : index
    %c0_80 = arith.constant 0 : index
    %350 = vector.load %arg4[%c192, %c0_80] : memref<280x128xf32, #tpu.memory_space<vmem>>, vector<1x32xf32>
    %351 = vector.broadcast %350 : vector<1x32xf32> to vector<2x32xf32>
    %352 = arith.addf %349, %351 : vector<2x32xf32>
    %cst_81 = arith.constant 0.000000e+00 : f32
    %353 = vector.broadcast %cst_81 : f32 to vector<2x32xf32>
    %354 = arith.maximumf %352, %353 : vector<2x32xf32>
    %c200 = arith.constant 200 : index
    %c0_82 = arith.constant 0 : index
    %355 = vector.load %arg4[%c200, %c0_82] : memref<280x128xf32, #tpu.memory_space<vmem>>, vector<32x32xf32>
    %cst_83 = arith.constant dense<0.000000e+00> : vector<2x32xf32>
    %356 = tpu.matmul %354, %355, %cst_83 {dimension_numbers = #tpu.dot_dimension_numbers<[1], [0], [0], [1], [0, 0, 1, 1], [], []>} : vector<2x32xf32>, vector<32x32xf32>, vector<2x32xf32> -> vector<2x32xf32>
    %c232 = arith.constant 232 : index
    %c0_84 = arith.constant 0 : index
    %357 = vector.load %arg4[%c232, %c0_84] : memref<280x128xf32, #tpu.memory_space<vmem>>, vector<1x32xf32>
    %358 = vector.broadcast %357 : vector<1x32xf32> to vector<2x32xf32>
    %359 = arith.addf %356, %358 : vector<2x32xf32>
    %cst_85 = arith.constant 0.000000e+00 : f32
    %360 = vector.broadcast %cst_85 : f32 to vector<2x32xf32>
    %361 = arith.maximumf %359, %360 : vector<2x32xf32>
    %c240 = arith.constant 240 : index
    %c0_86 = arith.constant 0 : index
    %362 = vector.load %arg4[%c240, %c0_86] : memref<280x128xf32, #tpu.memory_space<vmem>>, vector<32x8xf32>
    %cst_87 = arith.constant dense<0.000000e+00> : vector<2x8xf32>
    %363 = tpu.matmul %361, %362, %cst_87 {dimension_numbers = #tpu.dot_dimension_numbers<[1], [0], [0], [1], [0, 0, 1, 1], [], []>} : vector<2x32xf32>, vector<32x8xf32>, vector<2x8xf32> -> vector<2x8xf32>
    %c272 = arith.constant 272 : index
    %c0_88 = arith.constant 0 : index
    %364 = vector.load %arg4[%c272, %c0_88] : memref<280x128xf32, #tpu.memory_space<vmem>>, vector<1x8xf32>
    %365 = vector.broadcast %364 : vector<1x8xf32> to vector<2x8xf32>
    %366 = arith.addf %363, %365 : vector<2x8xf32>
    %c0_89 = arith.constant 0 : index
    %c0_90 = arith.constant 0 : index
    %367 = vector.load %arg5[%c0_89, %c0_90] : memref<2x8xf32, #tpu.memory_space<vmem>>, vector<2x8xf32>
    tpu.vector_store %arg5[%c0_89, %c0_90], %366 {strides = array<i32>} : memref<2x8xf32, #tpu.memory_space<vmem>>, vector<2x8xf32>,
    return
  }
}

</mosaic_0001>

<bundles_post_ra>
// kernel: spattrnn_forward.1
= control target key start
LH: loop header
LB: loop body
LE: loop exit
PB: predicated region body
PF: predicated region fallthrough
CT: control target
= control target key end

     0   :  { %vm29_vm0 = vcmask 261120   ;;  %s5482_s0 = inlined_call_operand.vmem [shape: f32[32,32], index: 0, kind: input, shape index: {}]   ;;  %s5483_s1 = inlined_call_operand.vmem [shape: f32[16,4], index: 1, kind: input, shape index: {}]   ;;  %s5484_s2 = inlined_call_operand.vmem [shape: f32[32,32], index: 2, kind: input, shape index: {}]   ;;  %s5485_s3 = inlined_call_operand.vmem [shape: f32[40,1024], index: 3, kind: input, shape index: {}]   ;;  %s5486_s4 = inlined_call_operand.vmem [shape: f32[280,128], index: 4, kind: input, shape index: {}]   ;;  %s5487_s5 = inlined_call_operand.hbm [shape: f32[2,8], index: 5, kind: output, shape index: {}]  }
   0x1   :  { %v28_v0 = vld [vmem:[%s5482_s0 + $0x18] sm:$0xff]  ;;  %v27_v1 = vld [vmem:[%s5482_s0 + $0x10] sm:$0xff]  ;;  %v21_v2 = vld [vmem:[%s5484_s2] sm:$0xff] }
   0x2   :  { %3830 = vmatprep.subr.mxu0 %v28_v0  ;;  %v26_v3 = vld [vmem:[%s5482_s0 + $0x8] sm:$0xff]  ;;  %3838 = vmatprep.mubr.msk.f32.mxu0 %vm29_vm0, %v21_v2  ;;  %v151_v5 = vld [vmem:[%s5485_s3 + $0xc0] sm:$0xff]  ;;  %v154_v11 = vld [vmem:[%s5485_s3 + $0xd8] sm:$0xff] }
   0x3   :  { %3831 = vmatpush3.msra.mxu0 %v28_v0  ;;  %v152_v4 = vld [vmem:[%s5485_s3 + $0xc8] sm:$0xff]  ;;  %v25_v6 = vld [vmem:[%s5482_s0] sm:$0xff] }
   0x4   :  { %3832 = vmatprep.subr.mxu0 %v27_v1  ;;  %240 = vmatprep.subr.mxu1 %v152_v4  ;;  %v144_v7 = vld [vmem:[%s5485_s3 + $0x88] sm:$0xff]  ;;  %v143_v8 = vld [vmem:[%s5485_s3 + $0x80] sm:$0xff] }
   0x5   :  { %3833 = vmatpush3.msra.mxu0 %v27_v1  ;;  %241 = vmatpush1.msra.mxu1 %v151_v5  ;;  %v136_v9 = vld [vmem:[%s5485_s3 + $0x48] sm:$0xff] }
   0x6   :  { %3834 = vmatprep.subr.mxu0 %v26_v3  ;;  %v22_v10 = vld [vmem:[%s5484_s2 + $0x8] sm:$0xff]  ;;  %242 = vmatprep.subr.mxu1 %v144_v7 }
   0x7   :  { %3835 = vmatpush3.msra.mxu0 %v26_v3 }
   0x8   :  { %10 = vsyncpa [#allocation4], 0  ;;  %3836 = vmatprep.subr.mxu0 %v25_v6  ;;  %v23_v12 = vld [vmem:[%s5484_s2 + $0x10] sm:$0xff]  ;;  %243 = vmatpush1.msra.mxu1 %v143_v8  ;;  %v146_v14 = vld [vmem:[%s5485_s3 + $0x98] sm:$0xff]  ;;  %v4437_v25 = vmov 0.0   ;;  %v164_v63 = vlaneseq  ;;  %vm619_vm1 = vcmask 1043456  }
   0x9   :  { %v153_v13 = vld [vmem:[%s5485_s3 + $0xd0] sm:$0xff]  ;;  %3837 = vmatpush3.msra.mxu0 %v25_v6  ;;  %244 = vmatprep.subr.mxu1 %v136_v9  ;;  %v24_v16 = vld [vmem:[%s5484_s2 + $0x18] sm:$0xff]  ;;  %v135_v19 = vld [vmem:[%s5485_s3 + $0x40] sm:$0xff]  ;;  %vm612_vm2 = vcmask 31744   ;;  %s4438_s11 = smov 64   ;;  %vm4439_vm3 = vmmov 0  }
   0xa   :  { %3839 = vmatmul.mubr.msk.f32.vlgmr.msra.gmra.mxu0 %vm29_vm0, %v22_v10  ;;  %329 = vmatprep.subr.mxu0 %v154_v11  ;;  %v145_v15 = vld [vmem:[%s5485_s3 + $0x90] sm:$0xff]  ;;  %v138_v17 = vld [vmem:[%s5485_s3 + $0x58] sm:$0xff]  ;;  %v128_v21 = vld [vmem:[%s5485_s3 + $0x8] sm:$0xff]  ;;  %v4712_v4 = vshrl.u32 %v164_v63, 7  ;;  %s4440_s16 = smov 32   ;;  %s4441_s21 = smov 96  }
   0xb   :  { %3841 = vmatprep.mubr.msk.f32.mxu0 %vm29_vm0, %v23_v12  ;;  %330 = vmatpush1.msra.mxu0 %v153_v13  ;;  %v137_v18 = vld [vmem:[%s5485_s3 + $0x50] sm:$0xff]  ;;  %v130_v20 = vld [vmem:[%s5485_s3 + $0x18] sm:$0xff]  ;;  %v127_v23 = vld [vmem:[%s5485_s3] sm:$0xff]  ;;  %vm3160_vm4 = vcmask 1041409   ;;  %s4442_s30 = smov [#allocation3]   ;;  %vm3565_vm5 = vcmask 58368  }
   0xc   :  { %331 = vmatprep.subr.mxu0 %v146_v14  ;;  %245 = vmatpush1.msra.mxu1 %v135_v19  ;;  %v129_v22 = vld [vmem:[%s5485_s3 + $0x10] sm:$0xff]  ;;  %v158_v24 = vld [vmem:[%s5485_s3 + $0xf8] sm:$0xff]  ;;  %v156_v26 = vld [vmem:[%s5485_s3 + $0xe8] sm:$0xff]  ;;  %v166_v12 = vsub.s32 0, %v4712_v4  ;;  %s3573_s6 = sshll.u32 %s4442_s30, 4  ;;  %s3574_s6 = int_to_ptr.vmem [resolvable:$true] %s3573_s6 }
   0xd   :  { %332 = vmatpush1.msra.mxu0 %v145_v15  ;;  %246 = vmatprep.subr.mxu1 %v128_v21  ;;  %v157_v28 = vld [vmem:[%s5485_s3 + $0xf0] sm:$0xff]  ;;  %v4563_v30 = vld [vmem:[%s5485_s3 + $0xb8] sm:$0xff]  ;;  %v155_v32 = vld [vmem:[%s5485_s3 + $0xe0] sm:$0xff]  ;;  %s4415_s2 = scalar_lea.vmem %s3574_s6, 32  ;;  %p4420_p1 = scmp.lt.s32.totalorder %s3574_s6, %s3574_s6 }
   0xe   :  { %3842 = vmatmul.mubr.msk.f32.gmra.mxu0 %vm29_vm0, %v24_v16  ;;  %333 = vmatprep.subr.mxu0 %v138_v17  ;;  %v4570_v31 = vld [vmem:[%s5485_s3 + $0xb0] sm:$0xff]  ;;  %v142_v34 = vld [vmem:[%s5485_s3 + $0x78] sm:$0xff]  ;;  %v148_v35 = vld [vmem:[%s5485_s3 + $0xa8] sm:$0xff]  ;;  %p4416_p0 = scmp.ne.s32.totalorder %s3574_s6, %s4415_s2  ;;  %p4421_p2 = scmp.lt.s32.totalorder %s4415_s2, %s4415_s2 }
   0xf   :  { %334 = vmatpush1.msra.mxu0 %v137_v18  ;;  %247 = vmatpush1.msra.mxu1 %v127_v23  ;;  %v141_v36 = vld [vmem:[%s5485_s3 + $0x70] sm:$0xff]  ;;  %v147_v37 = vld [vmem:[%s5485_s3 + $0xa0] sm:$0xff]  ;;  %v134_v39 = vld [vmem:[%s5485_s3 + $0x38] sm:$0xff] }
  0x10   :  { %335 = vmatprep.subr.mxu0 %v130_v20  ;;  %280 = vmatprep.mubr.f32.mxu1 %v4437_v25  ;;  %v140_v40 = vld [vmem:[%s5485_s3 + $0x68] sm:$0xff]  ;;  %v133_v41 = vld [vmem:[%s5485_s3 + $0x30] sm:$0xff]  ;;  %v139_v42 = vld [vmem:[%s5485_s3 + $0x60] sm:$0xff]  ;;  %p4422_p3 = por %p4421_p2, %p4420_p1 }
  0x11   :  { %336 = vmatpush1.msra.mxu0 %v129_v22  ;;  %369 = vmatprep.mubr.f32.mxu0 %v4437_v25  ;;  %v132_v43 = vld [vmem:[%s5485_s3 + $0x28] sm:$0xff]  ;;  %v131_v44 = vld [vmem:[%s5485_s3 + $0x20] sm:$0xff]  ;;  %v4626_v45 = vld [vmem:[%s5486_s4 + $0x18] sm:$0xff] }
  0x12   :  { %507 = vmatprep.subr.mxu0 %v158_v24  ;;  %418 = vmatprep.subr.mxu1 %v156_v26  ;;  %v4634_v46 = vld [vmem:[%s5486_s4 + $0x10] sm:$0xff]  ;;  %v4645_v47 = vld [vmem:[%s5486_s4 + $0x8] sm:$0xff]  ;;  %v4653_v48 = vld [vmem:[%s5486_s4] sm:$0xff]  ;;  %p4423_p4 = pnand %p4422_p3, %p4416_p0 }
  0x13   :  { %v3585_v5 = vld [vmem:[%s5485_s3 + $0x100] ss:$8 sm:$0xf] }
  0x14   :  { %v3586_v6 = vld [vmem:[%s5485_s3 + $0x100] ss:$8 sm:$0xf0] }
  0x15   :  { %v4728_v11 = vor.u32 %v3586_v6, %v3585_v5 }
  0x17   :  { %v167_v17 = vrot.slane %v4728_v11, %v166_v12 }
  0xca   :  { %v3840_v27 = vpop.f32.mrf.mxu0 }
  0xcc   :  { %v108_v29 = vpop.f32.mrf.mxu0 }
  0xcd   :  { %3587 = vmatmul.mubr.msk.f32.vlgmr.msra.gmra.mxu1 %vm29_vm0, %v108_v29  ;;  %3591 = vmatmul.mubr.msk.f32.vlgmr.msra.gmra.mxu0 %vm29_vm0, %v108_v29 }
  0xce   :  { %508 = vmatpush1.msra.mxu0 %v157_v28  ;;  %286 = vmatprep.mubr.f32.mxu1 %v4437_v25  ;;  %v4578_v33 = vpop.f32.mrf.mxu0 }
  0xcf   :  { %375 = vmatprep.mubr.f32.mxu0 %v4437_v25  ;;  %509 = vmatprep.subr.mxu0 %v4563_v30 }
  0xd0   :  { %510 = vmatpush1.msra.mxu0 %v4570_v31  ;;  %419 = vmatpush1.msra.mxu1 %v155_v32  ;;  %v118_v38 = vpop.f32.mrf.mxu0 }
  0xd1   :  { %3588 = vmatmul.mubr.msk.f32.gmra.mxu1 %vm29_vm0, %v3840_v27  ;;  %3592 = vmatmul.mubr.msk.f32.gmra.mxu0 %vm29_vm0, %v3840_v27 }
  0xd2   :  { %292 = vmatprep.mubr.f32.mxu1 %v4437_v25  ;;  %381 = vmatprep.mubr.f32.mxu0 %v4437_v25 }
  0xd3   :  { %511 = vmatprep.subr.mxu0 %v142_v34  ;;  %420 = vmatprep.subr.mxu1 %v148_v35 }
  0xd4   :  { %512 = vmatpush1.msra.mxu0 %v141_v36  ;;  %421 = vmatpush1.msra.mxu1 %v147_v37  ;;  %v606_v37 = vld [vmem:[%s5486_s4 + $0x20] sm:$0xf] }
  0xd5   :  { %3589 = vmatmul.mubr.msk.f32.gmra.mxu1 %vm29_vm0, %v118_v38  ;;  %3593 = vmatmul.mubr.msk.f32.gmra.mxu0 %vm29_vm0, %v118_v38 }
  0xd6   :  { %298 = vmatprep.mubr.f32.mxu1 %v4437_v25  ;;  %387 = vmatprep.mubr.f32.mxu0 %v4437_v25 }
  0xd7   :  { %513 = vmatprep.subr.mxu0 %v134_v39  ;;  %422 = vmatprep.subr.mxu1 %v140_v40 }
  0xd8   :  { %514 = vmatpush1.msra.mxu0 %v133_v41  ;;  %423 = vmatpush1.msra.mxu1 %v139_v42 }
  0xd9   :  { %3590 = vmatmul.mubr.msk.f32.gmra.mxu1 %vm29_vm0, %v4578_v33  ;;  %3594 = vmatmul.mubr.msk.f32.gmra.mxu0 %vm29_vm0, %v4578_v33 }
  0xda   :  { %424 = vmatprep.subr.mxu1 %v132_v43  ;;  %458 = vmatprep.mubr.f32.mxu1 %v4437_v25  ;;  %v4768_v43 = vld [vmem:[%s5486_s4 + $0x38] sm:$0xff] }
  0xdb   :  { %425 = vmatpush1.msra.mxu1 %v131_v44  ;;  %547 = vmatprep.mubr.f32.mxu0 %v4437_v25 }
  0xdc   :  { %3849 = vmatprep.subr.mxu0 %v4626_v45  ;;  %4104 = vmatprep.subr.mxu1 %v158_v24 }
  0xdd   :  { %3595 = vmatmul.mubr.msk.f32.vlgmr.msra.gmra.mxu1 %vm29_vm0, %v108_v29  ;;  %3599 = vmatmul.mubr.msk.f32.vlgmr.msra.gmra.mxu0 %vm29_vm0, %v108_v29 }
  0xde   :  { %3850 = vmatpush3.msra.mxu0 %v4626_v45  ;;  %464 = vmatprep.mubr.f32.mxu1 %v4437_v25 }
  0xdf   :  { %3851 = vmatprep.subr.mxu0 %v4634_v46  ;;  %553 = vmatprep.mubr.f32.mxu0 %v4437_v25 }
  0xe0   :  { %3852 = vmatpush3.msra.mxu0 %v4634_v46  ;;  %4108 = vmatpush1.msra.mxu1 %v157_v28 }
  0xe1   :  { %3596 = vmatmul.mubr.msk.f32.gmra.mxu1 %vm29_vm0, %v3840_v27  ;;  %3600 = vmatmul.mubr.msk.f32.gmra.mxu0 %vm29_vm0, %v3840_v27 }
  0xe2   :  { %3853 = vmatprep.subr.mxu0 %v4645_v47  ;;  %470 = vmatprep.mubr.f32.mxu1 %v4437_v25 }
  0xe3   :  { %3854 = vmatpush3.msra.mxu0 %v4645_v47  ;;  %559 = vmatprep.mubr.f32.mxu0 %v4437_v25 }
  0xe4   :  { %3855 = vmatprep.subr.mxu0 %v4653_v48  ;;  %4105 = vmatprep.subr.mxu1 %v4563_v30 }
  0xe5   :  { %3597 = vmatmul.mubr.msk.f32.gmra.mxu1 %vm29_vm0, %v118_v38  ;;  %3601 = vmatmul.mubr.msk.f32.gmra.mxu0 %vm29_vm0, %v118_v38  ;;  %v604_v38 = vld [vmem:[%s5483_s1] sm:$0xff] }
  0xe6   :  { %3856 = vmatpush3.msra.mxu0 %v4653_v48  ;;  %476 = vmatprep.mubr.f32.mxu1 %v4437_v25 }
  0xe7   :  { %4109 = vmatpush1.msra.mxu1 %v4570_v31  ;;  %3857 = vmatprep.mubr.f32.mxu0 %v4437_v25 }
  0xe8   :  { %4106 = vmatprep.subr.mxu1 %v142_v34  ;;  %3874 = vmatprep.subr.mxu0 %v4626_v45 }
  0xe9   :  { %3598 = vmatmul.mubr.msk.f32.gmra.mxu1 %vm29_vm0, %v4578_v33  ;;  %3858 = vmatmul.mubr.f32.vlgmr.msra.gmra.mxu0 %v4437_v25 }
  0xea   :  { %4110 = vmatpush1.msra.mxu1 %v141_v36  ;;  %565 = vmatprep.mubr.f32.mxu1 %v4437_v25 }
  0xeb   :  { %4107 = vmatprep.subr.mxu1 %v134_v39  ;;  %3860 = vmatprep.mubr.f32.mxu0 %v4437_v25  ;;  %v605_v39 = vld [vmem:[%s5483_s1 + $0x8] sm:$0xff] }
  0xec   :  { %4111 = vmatpush1.msra.mxu1 %v133_v41  ;;  %3875 = vmatpush3.msra.mxu0 %v4626_v45  ;;  %v4760_v41 = vld [vmem:[%s5486_s4 + $0x40] sm:$0xff] }
  0xed   :  { %3602 = vmatmul.mubr.msk.f32.vlgmr.msra.gmra.mxu1 %vm29_vm0, %v4578_v33  ;;  %3861 = vmatmul.mubr.f32.gmra.mxu0 %v4437_v25 }
  0xee   :  { %3876 = vmatprep.subr.mxu0 %v4634_v46  ;;  %3844 = vmatprep.subr.msk.mxu1 %vm619_vm1, %v606_v37 }
  0xef   :  { %3877 = vmatpush3.msra.mxu0 %v4634_v46  ;;  %3846 = vmatprep.mubr.msk.f32.mxu1 %vm612_vm2, %v604_v38 }
  0xf0   :  { %3878 = vmatprep.subr.mxu0 %v4645_v47  ;;  %3845 = vmatpush3.msk.msra.mxu1 %vm619_vm1, %v606_v37 }
  0xf1   :  { %3879 = vmatpush3.msra.mxu0 %v4645_v47  ;;  %3863 = vmatprep.subr.mxu1 %v4437_v25 }
  0xf2   :  { %3880 = vmatprep.subr.mxu0 %v4653_v48  ;;  %3847 = vmatmul.mubr.msk.f32.vlgmr.msra.gmra.mxu1 %vm612_vm2, %v605_v39 }
  0xf3   :  { %3881 = vmatpush3.msra.mxu0 %v4653_v48  ;;  %3864 = vmatpush3.msra.mxu1 %v4760_v41 }
  0xf4   :  { %3899 = vmatprep.subr.mxu0 %v4626_v45  ;;  %3871 = vmatprep.mubr.msk.f32.mxu1 %vm4439_vm3, %v4437_v25 }
  0xf5   :  { %3865 = vmatprep.subr.mxu1 %v4437_v25 }
  0xf6   :  { %3866 = vmatpush3.msra.mxu1 %v4768_v43 }
  0xf7   :  { %3867 = vmatprep.subr.mxu1 %v4437_v25 }
 0x18d   :  { %v282_v49 = vpop.f32.mrf.mxu1  ;;  %v4684_v50 = vpop.f32.mrf.mxu0 }
 0x18e   :  { %v283_v22 = vadd.f32 %v282_v49, %v167_v17  ;;  %v4778_v49 = vld [vmem:[%s5486_s4 + $0x30] sm:$0xff] }
 0x18f   :  { %v4686_v51 = vpop.f32.mrf.mxu1  ;;  %v4688_v52 = vpop.f32.mrf.mxu0  ;;  %3868 = vmatpush3.msra.mxu1 %v4778_v49 }
 0x190   :  { %3869 = vmatprep.subr.mxu1 %v4437_v25 }
 0x191   :  { %v288_v53 = vpop.f32.mrf.mxu1  ;;  %v4690_v54 = vpop.f32.mrf.mxu0 }
 0x192   :  { %v289_v26 = vadd.f32 %v288_v53, %v167_v17  ;;  %v4785_v53 = vld [vmem:[%s5486_s4 + $0x28] sm:$0xff] }
 0x193   :  { %v4692_v55 = vpop.f32.mrf.mxu1  ;;  %v4694_v56 = vpop.f32.mrf.mxu0  ;;  %3870 = vmatpush3.msra.mxu1 %v4785_v53 }
 0x194   :  { %3872 = vmatmul.mubr.f32.vlgmr.msra.gmra.mxu1 %v4437_v25  ;;  %3888 = vmatprep.subr.mxu1 %v4437_v25 }
 0x195   :  { %v294_v57 = vpop.f32.mrf.mxu1  ;;  %v4696_v58 = vpop.f32.mrf.mxu0  ;;  %3889 = vmatpush3.msra.mxu1 %v4760_v41  ;;  %3896 = vmatprep.mubr.msk.f32.mxu1 %vm4439_vm3, %v4437_v25 }
 0x196   :  { %v295_v30 = vadd.f32 %v294_v57, %v167_v17  ;;  %3890 = vmatprep.subr.mxu1 %v4437_v25 }
 0x197   :  { %v4698_v59 = vpop.f32.mrf.mxu1  ;;  %v4700_v60 = vpop.f32.mrf.mxu0  ;;  %3891 = vmatpush3.msra.mxu1 %v4768_v43 }
 0x198   :  { %3892 = vmatprep.subr.mxu1 %v4437_v25 }
 0x199   :  { %v300_v61 = vpop.f32.mrf.mxu1  ;;  %v4702_v62 = vpop.f32.mrf.mxu0  ;;  %3893 = vmatpush3.msra.mxu1 %v4778_v49 }
 0x19a   :  { %v301_v35 = vadd.f32 %v300_v61, %v167_v17  ;;  %3894 = vmatprep.subr.mxu1 %v4437_v25 }
 0x19b   :  { %v4704_v0 = vpop.f32.mrf.mxu1  ;;  %v4706_v1 = vpop.f32.mrf.mxu0  ;;  %3895 = vmatpush3.msra.mxu1 %v4785_v53 }
 0x19c   :  { %3913 = vmatprep.subr.mxu1 %v4437_v25 }
 0x19d   :  { %v4708_v2 = vpop.f32.mrf.mxu1  ;;  %v4710_v3 = vpop.f32.mrf.mxu0 }
 0x19f   :  { %v4720_v7 = vpop.f32.mrf.mxu1  ;;  %v4722_v8 = vpop.f32.mrf.mxu0 }
 0x1a1   :  { %v4724_v9 = vpop.f32.mrf.mxu1  ;;  %v4726_v10 = vpop.f32.mrf.mxu0 }
 0x1a3   :  { %v4731_v13 = vpop.f32.mrf.mxu1  ;;  %v557_v14 = vpop.f32.mrf.mxu0 }
 0x1a5   :  { %v4733_v15 = vpop.f32.mrf.mxu1  ;;  %v4735_v16 = vpop.f32.mrf.mxu0 }
 0x1a7   :  { %v4738_v18 = vpop.f32.mrf.mxu1  ;;  %v4740_v19 = vpop.f32.mrf.mxu0 }
 0x1a9   :  { %v4742_v20 = vpop.f32.mrf.mxu1  ;;  %v3859_v21 = vpop.f32.mrf.mxu0 }
 0x1aa   :  { %v804_v31 = vadd.f32 %v3859_v21, %v289_v26 }
 0x1ab   :  { %v4744_v23 = vpop.f32.mrf.mxu1  ;;  %v784_v24 = vpop.f32.mrf.mxu0 }
 0x1ac   :  { %v803_v27 = vadd.f32 %v784_v24, %v283_v22  ;;  %v3609_v63 = vmul.f32 -1.442695, %v804_v31 }
 0x1ad   :  { %v4746_v28 = vpop.f32.mrf.mxu1  ;;  %v3862_v29 = vpop.f32.mrf.mxu0 }
 0x1ae   :  { %4118 = vtanh.f32 %v803_v27  ;;  %v806_v36 = vadd.f32 %v3862_v29, %v301_v35  ;;  %v3608_v61 = vmul.f32 -1.442695, %v803_v27 }
 0x1af   :  { %v569_v32 = vpop.f32.mrf.mxu1  ;;  %v794_v33 = vpop.f32.mrf.mxu0  ;;  %4120 = vtanh.f32 %v804_v31 }
 0x1b0   :  { %v805_v34 = vadd.f32 %v794_v33, %v295_v30  ;;  %v3611_v6 = vmul.f32 -1.442695, %v806_v36 }
 0x1b2   :  { %4122 = vtanh.f32 %v805_v34  ;;  %v3610_v5 = vmul.f32 -1.442695, %v805_v34 }
 0x1b3   :  { %4124 = vtanh.f32 %v806_v36 }
 0x1b4   :  { %4126 = vpow2.f32 %v3608_v61 }
 0x1b5   :  { %4128 = vpow2.f32 %v3609_v63 }
 0x1b6   :  { %4130 = vpow2.f32 %v3610_v5 }
 0x1b7   :  { %4132 = vpow2.f32 %v3611_v6 }
 0x1bb   :  { %v4119_v40 = vpop.eup %4118 }
 0x1bc   :  { %913 = vrot.lane.b32.xlu0 %v4119_v40, %s4438_s11  ;;  %v4121_v42 = vpop.eup %4120 }
 0x1bf   :  { %v4123_v44 = vpop.eup %4122 }
 0x1c0   :  { %915 = vrot.lane.b32.xlu0 %v4121_v42, %s4438_s11  ;;  %917 = vrot.lane.b32.xlu1 %v4123_v44, %s4438_s11  ;;  %v4125_v57 = vpop.eup %4124 }
 0x1c1   :  { %v4127_v12 = vpop.eup %4126 }
 0x1c2   :  { %v4129_v14 = vpop.eup %4128  ;;  %v889_v17 = vadd.f32 1.0, %v4127_v12 }
 0x1c3   :  { %v4131_v21 = vpop.eup %4130  ;;  %v890_v22 = vadd.f32 1.0, %v4129_v14 }
 0x1c4   :  { %919 = vrot.lane.b32.xlu1 %v4125_v57, %s4438_s11  ;;  %4134 = vrcp.f32 %v889_v17  ;;  %v891_v24 = vadd.f32 1.0, %v4131_v21  ;;  %v4133_v26 = vpop.eup %4132  ;;  %v3848_v17 = vpop.f32.mrf.mxu1  ;;  %v3603_v21 = vld [vmem:[%s5486_s4 + $0x48] ss:$0 sm:$0xff] }
 0x1c5   :  { %4136 = vrcp.f32 %v890_v22  ;;  %v892_v29 = vadd.f32 1.0, %v4133_v26 }
 0x1c6   :  { %4138 = vrcp.f32 %v891_v24  ;;  %v4818_v24 = vadd.f32 %v3848_v17, %v3603_v21 }
 0x1c7   :  { %4140 = vrcp.f32 %v892_v29 }
 0x1d1   :  { %v4135_v27 = vpop.eup %4134 }
 0x1d2   :  { %v4137_v32 = vpop.eup %4136  ;;  %v905_v42 = vmul.f32 0.0, %v4135_v27 }
 0x1d3   :  { %v4139_v33 = vpop.eup %4138  ;;  %v906_v61 = vmul.f32 0.0, %v4137_v32 }
 0x1d4   :  { %v4141_v38 = vpop.eup %4140  ;;  %v907_v63 = vmul.f32 0.0, %v4139_v33 }
 0x1d5   :  { %v908_v22 = vmul.f32 0.0, %v4141_v38 }
 0x22e   :  { %v914_v30 = vpop.permute.xlu0 %913 }
 0x22f   :  { %v925_v31 = vmul.f32 %v4135_v27, %v914_v30  ;;  %v689_v30 = vpop.f32.mrf.mxu1 }
 0x231   :  { %933 = vrot.lane.b32.xlu0 %v925_v31, %s4440_s16 }
 0x232   :  { %v916_v34 = vpop.permute.xlu0 %915  ;;  %v918_v35 = vpop.permute.xlu1 %917 }
 0x233   :  { %v926_v36 = vmul.f32 %v4137_v32, %v916_v34  ;;  %v927_v37 = vmul.f32 %v4139_v33, %v918_v35 }
 0x235   :  { %935 = vrot.lane.b32.xlu1 %v926_v36, %s4440_s16  ;;  %937 = vrot.lane.b32.xlu0 %v927_v37, %s4440_s16 }
 0x236   :  { %v920_v39 = vpop.permute.xlu1 %919 }
 0x237   :  { %v928_v40 = vmul.f32 %v4141_v38, %v920_v39 }
 0x239   :  { %939 = vrot.lane.b32.xlu1 %v928_v40, %s4440_s16 }
 0x254   :  { %v873_v31 = vpop.f32.mrf.mxu1 }
 0x256   :  { %v3873_v34 = vpop.f32.mrf.mxu1 }
 0x2a3   :  { %v934_v44 = vpop.permute.xlu0 %933 }
 0x2a4   :  { %v4807_v57 = vadd.f32 %v934_v44, %v905_v42 }
 0x2a6   :  { %4142 = vtanh.f32 %v4807_v57 }
 0x2a7   :  { %v936_v5 = vpop.permute.xlu1 %935  ;;  %v938_v6 = vpop.permute.xlu0 %937 }
 0x2a8   :  { %v4810_v12 = vadd.f32 %v936_v5, %v906_v61  ;;  %v4812_v14 = vadd.f32 %v938_v6, %v907_v63  ;;  %v4832_v5 = vld [vmem:[%s5486_s4 + $0x50] ss:$0 sm:$0xff] }
 0x2a9   :  { %v874_v17 = vadd.f32 %v4832_v5, %v873_v31 }
 0x2aa   :  { %4144 = vtanh.f32 %v4810_v12 }
 0x2ab   :  { %4146 = vtanh.f32 %v4812_v14  ;;  %v940_v26 = vpop.permute.xlu1 %939 }
 0x2ac   :  { %v4821_v29 = vadd.f32 %v940_v26, %v908_v22 }
 0x2ae   :  { %4148 = vtanh.f32 %v4821_v29 }
 0x2b3   :  { %v4143_v35 = vpop.eup %4142 }
 0x2b4   :  { %957 = vrot.lane.b32.xlu0 %v4143_v35, %s4438_s11 }
 0x2b7   :  { %v4145_v36 = vpop.eup %4144 }
 0x2b8   :  { %v4147_v37 = vpop.eup %4146  ;;  %959 = vrot.lane.b32.xlu1 %v4145_v36, %s4438_s11 }
 0x2b9   :  { %961 = vrot.lane.b32.xlu0 %v4147_v37, %s4438_s11 }
 0x2bb   :  { %v4149_v39 = vpop.eup %4148 }
 0x2bc   :  { %963 = vrot.lane.b32.xlu1 %v4149_v39, %s4438_s11 }
 0x326   :  { %v958_v40 = vpop.permute.xlu0 %957 }
 0x327   :  { %v969_v42 = vmul.f32 %v4135_v27, %v958_v40  ;;  %v4839_v27 = vadd.f32 %v3603_v21, %v689_v30 }
 0x329   :  { %1007 = vrot.lane.b32.xlu0 %v969_v42, %s4440_s16 }
 0x32a   :  { %v960_v44 = vpop.permute.xlu1 %959 }
 0x32b   :  { %v970_v61 = vmul.f32 %v4137_v32, %v960_v44  ;;  %v962_v63 = vpop.permute.xlu0 %961  ;;  %v973_v32 = vadd.f32 %v874_v17, %v4839_v27 }
 0x32c   :  { %v971_v6 = vmul.f32 %v4139_v33, %v962_v63 }
 0x32d   :  { %1009 = vrot.lane.b32.xlu1 %v970_v61, %s4440_s16  ;;  %v3612_v34 = vmul.f32 -1.442695, %v973_v32  ;;  %v170_v61 = vsub.s32 1, %v4712_v4 }
 0x32e   :  { %1011 = vrot.lane.b32.xlu0 %v971_v6, %s4440_s16  ;;  %v964_v22 = vpop.permute.xlu1 %963 }
 0x32f   :  { %v972_v26 = vmul.f32 %v4141_v38, %v964_v22  ;;  %4150 = vpow2.f32 %v3612_v34  ;;  %v171_v63 = vrot.slane %v4728_v11, %v170_v61 }
 0x331   :  { %1013 = vrot.lane.b32.xlu1 %v972_v26, %s4440_s16  ;;  %v291_v6 = vadd.f32 %v4692_v55, %v171_v63  ;;  %v285_v22 = vadd.f32 %v4686_v51, %v171_v63  ;;  %v303_v34 = vadd.f32 %v4704_v0, %v171_v63 }
 0x332   :  { %981 = vrot.lane.b32.xlu0 %v874_v17, %s4438_s11 }
 0x33c   :  { %v4151_v35 = vpop.eup %4150 }
 0x33d   :  { %v977_v33 = vadd.f32 1.0, %v4151_v35 }
 0x33f   :  { %4152 = vrcp.f32 %v977_v33 }
 0x34c   :  { %v4153_v21 = vpop.eup %4152 }
 0x39b   :  { %v1008_v36 = vpop.permute.xlu0 %1007 }
 0x39c   :  { %3882 = vmatprep.mubr.msk.f32.mxu0 %vm29_vm0, %v1008_v36  ;;  %v297_v36 = vadd.f32 %v4698_v59, %v171_v63 }
 0x39f   :  { %v1010_v37 = vpop.permute.xlu1 %1009 }
 0x3a0   :  { %v1012_v31 = vpop.permute.xlu0 %1011  ;;  %3883 = vmatmul.mubr.msk.f32.vlgmr.msra.gmra.mxu0 %vm29_vm0, %v1010_v37 }
 0x3a1   :  { %3885 = vmatprep.mubr.msk.f32.mxu0 %vm29_vm0, %v1012_v31  ;;  %3900 = vmatpush3.msra.mxu0 %v4626_v45 }
 0x3a2   :  { %3901 = vmatprep.subr.mxu0 %v4634_v46 }
 0x3a3   :  { %v1014_v38 = vpop.permute.xlu1 %1013  ;;  %3902 = vmatpush3.msra.mxu0 %v4634_v46 }
 0x3a4   :  { %v982_v30 = vpop.permute.xlu0 %981  ;;  %3886 = vmatmul.mubr.msk.f32.gmra.mxu0 %vm29_vm0, %v1014_v38  ;;  %3903 = vmatprep.subr.mxu0 %v4645_v47 }
 0x3a5   :  { %v984_v39 = vmul.f32 %v4153_v21, %v982_v30  ;;  %3904 = vmatpush3.msra.mxu0 %v4645_v47 }
 0x3a6   :  { %3905 = vmatprep.subr.mxu0 %v4653_v48 }
 0x3a7   :  { %986 = vrot.lane.b32.xlu1 %v984_v39, %s4438_s11  ;;  %3906 = vmatpush3.msra.mxu0 %v4653_v48  ;;  %v991_v39 = vsub.f32 1.0, %v4153_v21 }
 0x3a8   :  { %3924 = vmatprep.subr.mxu0 %v4626_v45 }
 0x419   :  { %v987_v40 = vpop.permute.xlu1 %986 }
 0x41a   :  { %v989_v42 = vadd.f32 %v987_v40, %v4839_v27  ;;  %v997_v40 = vmul.f32 0.0, %v4153_v21 }
 0x41c   :  { %4154 = vtanh.f32 %v989_v42 }
 0x429   :  { %v4155_v44 = vpop.eup %4154 }
 0x42a   :  { %993 = vrot.lane.b32.xlu0 %v4155_v44, %s4441_s21 }
 0x460   :  { %v3884_v17 = vpop.f32.mrf.mxu0 }
 0x461   :  { %v1109_v26 = vadd.f32 %v3884_v17, %v291_v6 }
 0x462   :  { %v1089_v32 = vpop.f32.mrf.mxu0 }
 0x463   :  { %4156 = vtanh.f32 %v1109_v26  ;;  %v1108_v35 = vadd.f32 %v1089_v32, %v285_v22  ;;  %v3619_v61 = vmul.f32 -1.442695, %v1109_v26 }
 0x464   :  { %v3887_v33 = vpop.f32.mrf.mxu0 }
 0x465   :  { %v1111_v37 = vadd.f32 %v3887_v33, %v303_v34  ;;  %4158 = vtanh.f32 %v1108_v35  ;;  %v3618_v63 = vmul.f32 -1.442695, %v1108_v35 }
 0x466   :  { %v1099_v31 = vpop.f32.mrf.mxu0 }
 0x467   :  { %v1110_v38 = vadd.f32 %v1099_v31, %v297_v36  ;;  %4160 = vtanh.f32 %v1111_v37  ;;  %v3621_v6 = vmul.f32 -1.442695, %v1111_v37 }
 0x469   :  { %4162 = vtanh.f32 %v1110_v38  ;;  %v3620_v17 = vmul.f32 -1.442695, %v1110_v38 }
 0x46a   :  { %4164 = vpow2.f32 %v3619_v61 }
 0x46b   :  { %4166 = vpow2.f32 %v3618_v63 }
 0x46c   :  { %4168 = vpow2.f32 %v3621_v6 }
 0x46d   :  { %4170 = vpow2.f32 %v3620_v17 }
 0x470   :  { %v4157_v30 = vpop.eup %4156 }
 0x471   :  { %1225 = vrot.lane.b32.xlu0 %v4157_v30, %s4438_s11 }
 0x472   :  { %v4159_v55 = vpop.eup %4158 }
 0x473   :  { %1223 = vrot.lane.b32.xlu1 %v4159_v55, %s4438_s11 }
 0x474   :  { %v4161_v51 = vpop.eup %4160 }
 0x475   :  { %1229 = vrot.lane.b32.xlu0 %v4161_v51, %s4438_s11 }
 0x476   :  { %v4163_v0 = vpop.eup %4162 }
 0x477   :  { %1227 = vrot.lane.b32.xlu1 %v4163_v0, %s4438_s11  ;;  %v4165_v22 = vpop.eup %4164 }
 0x478   :  { %v4167_v32 = vpop.eup %4166  ;;  %v1200_v34 = vadd.f32 1.0, %v4165_v22 }
 0x479   :  { %v4169_v33 = vpop.eup %4168  ;;  %v1199_v36 = vadd.f32 1.0, %v4167_v32 }
 0x47a   :  { %v4171_v21 = vpop.eup %4170  ;;  %4172 = vrcp.f32 %v1200_v34  ;;  %v1202_v31 = vadd.f32 1.0, %v4169_v33 }
 0x47b   :  { %4174 = vrcp.f32 %v1199_v36  ;;  %v1201_v30 = vadd.f32 1.0, %v4171_v21 }
 0x47c   :  { %4176 = vrcp.f32 %v1202_v31 }
 0x47d   :  { %4178 = vrcp.f32 %v1201_v30 }
 0x487   :  { %v4173_v26 = vpop.eup %4172 }
 0x488   :  { %v4175_v37 = vpop.eup %4174  ;;  %v1216_v6 = vmul.f32 %v4173_v26, %v4810_v12 }
 0x489   :  { %v4177_v0 = vpop.eup %4176  ;;  %v1215_v32 = vmul.f32 %v4175_v37, %v4807_v57 }
 0x48a   :  { %v1218_v36 = vmul.f32 %v4177_v0, %v4821_v29 }
 0x49c   :  { %v994_v59 = vpop.permute.xlu0 %993 }
 0x49d   :  { %v996_v42 = vmul.f32 %v994_v59, %v991_v39 }
 0x49f   :  { %v4867_v44 = vadd.f32 %v997_v40, %v996_v42  ;;  %v4179_v40 = vpop.eup %4178 }
 0x4a0   :  { %v1217_v30 = vmul.f32 %v4179_v40, %v4812_v14 }
 0x4a1   :  { %1113 = vrot.lane.b32.xlu1 %v4867_v44, %s4441_s21 }
 0x4e3   :  { %v1226_v35 = vpop.permute.xlu0 %1225 }
 0x4e4   :  { %v1236_v55 = vmul.f32 %v4173_v26, %v1226_v35 }
 0x4e5   :  { %v1224_v51 = vpop.permute.xlu1 %1223 }
 0x4e6   :  { %1245 = vrot.lane.b32.xlu1 %v1236_v55, %s4440_s16  ;;  %v1235_v38 = vmul.f32 %v4175_v37, %v1224_v51 }
 0x4e7   :  { %v1230_v39 = vpop.permute.xlu0 %1229 }
 0x4e8   :  { %v1238_v59 = vmul.f32 %v4177_v0, %v1230_v39  ;;  %1243 = vrot.lane.b32.xlu0 %v1235_v38, %s4440_s16 }
 0x4e9   :  { %v1228_v42 = vpop.permute.xlu1 %1227 }
 0x4ea   :  { %v1237_v61 = vmul.f32 %v4179_v40, %v1228_v42  ;;  %1249 = vrot.lane.b32.xlu1 %v1238_v59, %s4440_s16 }
 0x4ec   :  { %1247 = vrot.lane.b32.xlu0 %v1237_v61, %s4440_s16 }
 0x513   :  { %v1114_v63 = vpop.permute.xlu1 %1113 }
 0x514   :  { %3897 = vmatmul.mubr.msk.f32.vlgmr.msra.gmra.mxu1 %vm29_vm0, %v1114_v63 }
 0x515   :  { %3914 = vmatpush3.msra.mxu1 %v4760_v41  ;;  %3921 = vmatprep.mubr.msk.f32.mxu1 %vm4439_vm3, %v4437_v25 }
 0x516   :  { %3915 = vmatprep.subr.mxu1 %v4437_v25 }
 0x517   :  { %3916 = vmatpush3.msra.mxu1 %v4768_v43 }
 0x518   :  { %3917 = vmatprep.subr.mxu1 %v4437_v25 }
 0x519   :  { %3918 = vmatpush3.msra.mxu1 %v4778_v49 }
 0x51a   :  { %3919 = vmatprep.subr.mxu1 %v4437_v25 }
 0x51b   :  { %3920 = vmatpush3.msra.mxu1 %v4785_v53 }
 0x51c   :  { %3938 = vmatprep.subr.mxu1 %v4437_v25 }
 0x558   :  { %v1246_v17 = vpop.permute.xlu1 %1245 }
 0x559   :  { %v4887_v22 = vadd.f32 %v1246_v17, %v1216_v6 }
 0x55a   :  { %v1244_v34 = vpop.permute.xlu0 %1243 }
 0x55b   :  { %4180 = vtanh.f32 %v4887_v22  ;;  %v4891_v33 = vadd.f32 %v1244_v34, %v1215_v32 }
 0x55c   :  { %v1250_v21 = vpop.permute.xlu1 %1249 }
 0x55d   :  { %4182 = vtanh.f32 %v4891_v33  ;;  %v4895_v31 = vadd.f32 %v1250_v21, %v1218_v36 }
 0x55e   :  { %v1248_v12 = vpop.permute.xlu0 %1247 }
 0x55f   :  { %4184 = vtanh.f32 %v4895_v31  ;;  %v4899_v35 = vadd.f32 %v1248_v12, %v1217_v30 }
 0x561   :  { %4186 = vtanh.f32 %v4899_v35 }
 0x568   :  { %v4181_v57 = vpop.eup %4180 }
 0x569   :  { %1269 = vrot.lane.b32.xlu1 %v4181_v57, %s4438_s11 }
 0x56a   :  { %v4183_v55 = vpop.eup %4182 }
 0x56b   :  { %1267 = vrot.lane.b32.xlu0 %v4183_v55, %s4438_s11 }
 0x56c   :  { %v4185_v29 = vpop.eup %4184 }
 0x56d   :  { %1273 = vrot.lane.b32.xlu1 %v4185_v29, %s4438_s11 }
 0x56e   :  { %v4187_v51 = vpop.eup %4186 }
 0x56f   :  { %1271 = vrot.lane.b32.xlu0 %v4187_v51, %s4438_s11 }
 0x5d4   :  { %v1183_v14 = vpop.f32.mrf.mxu1 }
 0x5d5   :  { %v1184_v32 = vadd.f32 %v4832_v5, %v1183_v14 }
 0x5d6   :  { %v3898_v38 = vpop.f32.mrf.mxu1 }
 0x5d7   :  { %v1284_v36 = vrot.slane %v1184_v32, 6 }
 0x5db   :  { %v1270_v39 = vpop.permute.xlu1 %1269 }
 0x5dc   :  { %v1280_v59 = vmul.f32 %v4173_v26, %v1270_v39  ;;  %v1286_v26 = vadd.f32 %v1284_v36, %v4839_v27 }
 0x5dd   :  { %v1268_v42 = vpop.permute.xlu0 %1267 }
 0x5de   :  { %1323 = vrot.lane.b32.xlu1 %v1280_v59, %s4440_s16  ;;  %v1279_v61 = vmul.f32 %v4175_v37, %v1268_v42  ;;  %v3622_v21 = vmul.f32 -1.442695, %v1286_v26 }
 0x5df   :  { %v1274_v63 = vpop.permute.xlu1 %1273 }
 0x5e0   :  { %v1282_v6 = vmul.f32 %v4177_v0, %v1274_v63  ;;  %1321 = vrot.lane.b32.xlu0 %v1279_v61, %s4440_s16  ;;  %4188 = vpow2.f32 %v3622_v21 }
 0x5e1   :  { %v1272_v17 = vpop.permute.xlu0 %1271 }
 0x5e2   :  { %v1281_v34 = vmul.f32 %v4179_v40, %v1272_v17  ;;  %1327 = vrot.lane.b32.xlu1 %v1282_v6, %s4440_s16 }
 0x5e4   :  { %1325 = vrot.lane.b32.xlu0 %v1281_v34, %s4440_s16 }
 0x5e8   :  { %1293 = vrot.lane.b32.xlu0 %v1284_v36, %s4438_s11 }
 0x5ed   :  { %v4189_v37 = vpop.eup %4188 }
 0x5ee   :  { %v1290_v30 = vadd.f32 1.0, %v4189_v37  ;;  %v1309_v37 = vrot.slane %v4867_v44, 6 }
 0x5f0   :  { %4190 = vrcp.f32 %v1290_v30 }
 0x5fd   :  { %v4191_v55 = vpop.eup %4190 }
 0x650   :  { %v1324_v0 = vpop.permute.xlu1 %1323 }
 0x652   :  { %v1322_v12 = vpop.permute.xlu0 %1321 }
 0x653   :  { %3907 = vmatprep.mubr.msk.f32.mxu0 %vm29_vm0, %v1322_v12 }
 0x654   :  { %3908 = vmatmul.mubr.msk.f32.vlgmr.msra.gmra.mxu0 %vm29_vm0, %v1324_v0  ;;  %v1328_v57 = vpop.permute.xlu1 %1327  ;;  %v1311_v0 = vmul.f32 %v4191_v55, %v1309_v37 }
 0x655   :  { %3925 = vmatpush3.msra.mxu0 %v4626_v45 }
 0x656   :  { %v1326_v40 = vpop.permute.xlu0 %1325  ;;  %3926 = vmatprep.subr.mxu0 %v4634_v46 }
 0x657   :  { %3910 = vmatprep.mubr.msk.f32.mxu0 %vm29_vm0, %v1326_v40  ;;  %3927 = vmatpush3.msra.mxu0 %v4634_v46 }
 0x658   :  { %3911 = vmatmul.mubr.msk.f32.gmra.mxu0 %vm29_vm0, %v1328_v57  ;;  %3928 = vmatprep.subr.mxu0 %v4645_v47 }
 0x659   :  { %3929 = vmatpush3.msra.mxu0 %v4645_v47  ;;  %v174_v47 = vsub.s32 2, %v4712_v4 }
 0x65a   :  { %v1294_v29 = vpop.permute.xlu0 %1293  ;;  %3930 = vmatprep.subr.mxu0 %v4653_v48 }
 0x65b   :  { %v1296_v51 = vmul.f32 %v4191_v55, %v1294_v29  ;;  %3931 = vmatpush3.msra.mxu0 %v4653_v48  ;;  %v175_v39 = vrot.slane %v4728_v11, %v174_v47 }
 0x65c   :  { %3949 = vmatprep.subr.mxu0 %v4626_v45 }
 0x65d   :  { %1298 = vrot.lane.b32.xlu1 %v1296_v51, %s4438_s11  ;;  %v378_v59 = vadd.f32 %v4690_v54, %v175_v39  ;;  %v372_v48 = vadd.f32 %v4684_v50, %v175_v39  ;;  %v384_v17 = vadd.f32 %v4696_v58, %v175_v39  ;;  %v390_v50 = vadd.f32 %v4702_v62, %v175_v39 }
 0x65e   :  { %v1303_v58 = vsub.f32 1.0, %v4191_v55 }
 0x6cf   :  { %v1299_v14 = vpop.permute.xlu1 %1298 }
 0x6d0   :  { %v1301_v46 = vadd.f32 %v1299_v14, %v4839_v27 }
 0x6d2   :  { %4192 = vtanh.f32 %v1301_v46 }
 0x6df   :  { %v4193_v38 = vpop.eup %4192 }
 0x6e0   :  { %1305 = vrot.lane.b32.xlu0 %v4193_v38, %s4441_s21 }
 0x714   :  { %v3909_v42 = vpop.f32.mrf.mxu0 }
 0x715   :  { %v1423_v61 = vadd.f32 %v3909_v42, %v378_v59 }
 0x716   :  { %v1403_v45 = vpop.f32.mrf.mxu0 }
 0x717   :  { %4194 = vtanh.f32 %v1423_v61  ;;  %v1422_v63 = vadd.f32 %v1403_v45, %v372_v48  ;;  %v3629_v51 = vmul.f32 -1.442695, %v1423_v61 }
 0x718   :  { %v3912_v6 = vpop.f32.mrf.mxu0 }
 0x719   :  { %4196 = vtanh.f32 %v1422_v63  ;;  %v1425_v21 = vadd.f32 %v3912_v6, %v390_v50  ;;  %v3628_v14 = vmul.f32 -1.442695, %v1422_v63 }
 0x71a   :  { %v1413_v32 = vpop.f32.mrf.mxu0 }
 0x71b   :  { %v1424_v34 = vadd.f32 %v1413_v32, %v384_v17 }
 0x71d   :  { %4198 = vtanh.f32 %v1424_v34  ;;  %v3630_v62 = vmul.f32 -1.442695, %v1424_v34  ;;  %v3631_v34 = vmul.f32 -1.442695, %v1425_v21 }
 0x71e   :  { %4200 = vtanh.f32 %v1425_v21 }
 0x71f   :  { %4202 = vpow2.f32 %v3629_v51 }
 0x720   :  { %4204 = vpow2.f32 %v3628_v14 }
 0x721   :  { %4206 = vpow2.f32 %v3630_v62 }
 0x724   :  { %v4195_v36 = vpop.eup %4194 }
 0x725   :  { %1540 = vrot.lane.b32.xlu0 %v4195_v36, %s4438_s11 }
 0x726   :  { %v4197_v26 = vpop.eup %4196 }
 0x727   :  { %1538 = vrot.lane.b32.xlu1 %v4197_v26, %s4438_s11 }
 0x72a   :  { %v4199_v54 = vpop.eup %4198 }
 0x72b   :  { %1542 = vrot.lane.b32.xlu0 %v4199_v54, %s4438_s11  ;;  %v4201_v29 = vpop.eup %4200 }
 0x72c   :  { %v4203_v44 = vpop.eup %4202 }
 0x72d   :  { %v4205_v46 = vpop.eup %4204  ;;  %v1515_v38 = vadd.f32 1.0, %v4203_v44 }
 0x72e   :  { %v1514_v55 = vadd.f32 1.0, %v4205_v46  ;;  %v4207_v47 = vpop.eup %4206 }
 0x72f   :  { %4208 = vrcp.f32 %v1515_v38  ;;  %v1516_v39 = vadd.f32 1.0, %v4207_v47 }
 0x730   :  { %4210 = vrcp.f32 %v1514_v55 }
 0x731   :  { %4212 = vrcp.f32 %v1516_v39 }
 0x732   :  { %4214 = vpow2.f32 %v3631_v34 }
 0x73c   :  { %v4209_v59 = vpop.eup %4208 }
 0x73d   :  { %v4211_v45 = vpop.eup %4210 }
 0x73e   :  { %v4213_v63 = vpop.eup %4212 }
 0x73f   :  { %v4215_v36 = vpop.eup %4214 }
 0x740   :  { %v1517_v26 = vadd.f32 1.0, %v4215_v36 }
 0x742   :  { %4216 = vrcp.f32 %v1517_v26 }
 0x74f   :  { %v4217_v50 = vpop.eup %4216 }
 0x750   :  { %v1533_v14 = vmul.f32 %v4217_v50, %v4895_v31 }
 0x752   :  { %v1306_v30 = vpop.permute.xlu0 %1305 }
 0x753   :  { %v1308_v12 = vmul.f32 %v1306_v30, %v1303_v58 }
 0x755   :  { %v4938_v40 = vadd.f32 %v1311_v0, %v1308_v12 }
 0x757   :  { %v1427_v57 = vrot.slane %v4938_v40, 2 }
 0x759   :  { %1428 = vrot.lane.b32.xlu1 %v1427_v57, %s4441_s21  ;;  %v1532_v57 = vmul.f32 %v4213_v63, %v4899_v35 }
 0x75d   :  { %1544 = vrot.lane.b32.xlu1 %v4201_v29, %s4438_s11 }
 0x797   :  { %v1541_v42 = vpop.permute.xlu0 %1540 }
 0x798   :  { %v1551_v48 = vmul.f32 %v4209_v59, %v1541_v42 }
 0x799   :  { %v1539_v6 = vpop.permute.xlu1 %1538 }
 0x79a   :  { %1560 = vrot.lane.b32.xlu1 %v1551_v48, %s4440_s16  ;;  %v1550_v61 = vmul.f32 %v4211_v45, %v1539_v6 }
 0x79c   :  { %1558 = vrot.lane.b32.xlu0 %v1550_v61, %s4440_s16 }
 0x79d   :  { %v1543_v17 = vpop.permute.xlu0 %1542 }
 0x79e   :  { %v1552_v32 = vmul.f32 %v4213_v63, %v1543_v17 }
 0x7a0   :  { %1562 = vrot.lane.b32.xlu0 %v1552_v32, %s4440_s16 }
 0x7cb   :  { %v1429_v54 = vpop.permute.xlu1 %1428 }
 0x7cc   :  { %3922 = vmatmul.mubr.msk.f32.vlgmr.msra.gmra.mxu1 %vm29_vm0, %v1429_v54 }
 0x7cd   :  { %3939 = vmatpush3.msra.mxu1 %v4760_v41  ;;  %3946 = vmatprep.mubr.msk.f32.mxu1 %vm4439_vm3, %v4437_v25  ;;  %v1531_v41 = vmul.f32 %v4209_v59, %v4887_v22 }
 0x7ce   :  { %3940 = vmatprep.subr.mxu1 %v4437_v25 }
 0x7cf   :  { %v1545_v37 = vpop.permute.xlu1 %1544  ;;  %3941 = vmatpush3.msra.mxu1 %v4768_v43  ;;  %v1530_v43 = vmul.f32 %v4211_v45, %v4891_v33 }
 0x7d0   :  { %v1553_v58 = vmul.f32 %v4217_v50, %v1545_v37  ;;  %3942 = vmatprep.subr.mxu1 %v4437_v25  ;;  %v4996_v37 = vld [vmem:[%s5486_s4 + $0x10] sm:$0xff] }
 0x7d1   :  { %3943 = vmatpush3.msra.mxu1 %v4778_v49 }
 0x7d2   :  { %1564 = vrot.lane.b32.xlu1 %v1553_v58, %s4440_s16  ;;  %3944 = vmatprep.subr.mxu1 %v4437_v25  ;;  %v5004_v58 = vld [vmem:[%s5486_s4 + $0x8] sm:$0xff] }
 0x7d3   :  { %3945 = vmatpush3.msra.mxu1 %v4785_v53 }
 0x7d4   :  { %3963 = vmatprep.subr.mxu1 %v4437_v25 }
 0x80c   :  { %v1561_v21 = vpop.permute.xlu1 %1560 }
 0x80d   :  { %v4959_v30 = vadd.f32 %v1561_v21, %v1531_v41 }
 0x80e   :  { %v1559_v0 = vpop.permute.xlu0 %1558 }
 0x80f   :  { %4218 = vtanh.f32 %v4959_v30  ;;  %v4963_v12 = vadd.f32 %v1559_v0, %v1530_v43  ;;  %v5011_v43 = vld [vmem:[%s5486_s4] sm:$0xff] }
 0x811   :  { %4220 = vtanh.f32 %v4963_v12 }
 0x812   :  { %v1563_v29 = vpop.permute.xlu0 %1562 }
 0x813   :  { %v4967_v53 = vadd.f32 %v1563_v29, %v1532_v57 }
 0x815   :  { %4222 = vtanh.f32 %v4967_v53 }
 0x81c   :  { %v4219_v22 = vpop.eup %4218 }
 0x81d   :  { %1584 = vrot.lane.b32.xlu1 %v4219_v22, %s4438_s11 }
 0x81e   :  { %v4221_v51 = vpop.eup %4220 }
 0x81f   :  { %1582 = vrot.lane.b32.xlu0 %v4221_v51, %s4438_s11 }
 0x822   :  { %v4223_v33 = vpop.eup %4222 }
 0x823   :  { %1586 = vrot.lane.b32.xlu0 %v4223_v33, %s4438_s11  ;;  %v178_v33 = vsub.s32 3, %v4712_v4 }
 0x844   :  { %v1565_v62 = vpop.permute.xlu1 %1564 }
 0x845   :  { %v4974_v44 = vadd.f32 %v1565_v62, %v1533_v14  ;;  %v179_v14 = vrot.slane %v4728_v11, %v178_v33 }
 0x847   :  { %4224 = vtanh.f32 %v4974_v44 }
 0x854   :  { %v4225_v35 = vpop.eup %4224 }
 0x855   :  { %1588 = vrot.lane.b32.xlu1 %v4225_v35, %s4438_s11  ;;  %v374_v35 = vadd.f32 %v4688_v52, %v179_v14  ;;  %v1624_v52 = vrot.slane %v4938_v40, 6 }
 0x88c   :  { %v1498_v46 = vpop.f32.mrf.mxu1 }
 0x88d   :  { %v1499_v31 = vadd.f32 %v4832_v5, %v1498_v46 }
 0x88e   :  { %v3923_v38 = vpop.f32.mrf.mxu1 }
 0x88f   :  { %v1585_v55 = vpop.permute.xlu1 %1584  ;;  %v1599_v61 = vrot.slane %v1499_v31, 4 }
 0x890   :  { %v1595_v47 = vmul.f32 %v4209_v59, %v1585_v55 }
 0x891   :  { %v1583_v39 = vpop.permute.xlu0 %1582  ;;  %v1601_v59 = vadd.f32 %v1599_v61, %v4839_v27 }
 0x892   :  { %1638 = vrot.lane.b32.xlu1 %v1595_v47, %s4440_s16  ;;  %v1594_v42 = vmul.f32 %v4211_v45, %v1583_v39  ;;  %v380_v39 = vadd.f32 %v4694_v56, %v179_v14 }
 0x893   :  { %v3632_v34 = vmul.f32 -1.442695, %v1601_v59 }
 0x894   :  { %1636 = vrot.lane.b32.xlu0 %v1594_v42, %s4440_s16  ;;  %v386_v42 = vadd.f32 %v4700_v60, %v179_v14 }
 0x895   :  { %v1587_v48 = vpop.permute.xlu0 %1586  ;;  %4226 = vpow2.f32 %v3632_v34 }
 0x896   :  { %v1596_v6 = vmul.f32 %v4213_v63, %v1587_v48  ;;  %v4990_v63 = vld [vmem:[%s5486_s4 + $0x18] sm:$0xff] }
 0x898   :  { %1640 = vrot.lane.b32.xlu0 %v1596_v6, %s4440_s16 }
 0x89c   :  { %1608 = vrot.lane.b32.xlu0 %v1599_v61, %s4438_s11  ;;  %v392_v61 = vadd.f32 %v4706_v1, %v179_v14 }
 0x8a2   :  { %v4227_v45 = vpop.eup %4226 }
 0x8a3   :  { %v1605_v36 = vadd.f32 1.0, %v4227_v45 }
 0x8a5   :  { %4228 = vrcp.f32 %v1605_v36 }
 0x8b2   :  { %v4229_v41 = vpop.eup %4228 }
 0x8b3   :  { %v1626_v34 = vmul.f32 %v4229_v41, %v1624_v52 }
 0x8c7   :  { %v1589_v17 = vpop.permute.xlu1 %1588 }
 0x8c8   :  { %v1597_v32 = vmul.f32 %v4217_v50, %v1589_v17 }
 0x8ca   :  { %1642 = vrot.lane.b32.xlu1 %v1597_v32, %s4440_s16  ;;  %v1618_v32 = vsub.f32 1.0, %v4229_v41 }
 0x904   :  { %v1639_v54 = vpop.permute.xlu1 %1638 }
 0x906   :  { %v1637_v26 = vpop.permute.xlu0 %1636 }
 0x907   :  { %3932 = vmatprep.mubr.msk.f32.mxu0 %vm29_vm0, %v1637_v26 }
 0x908   :  { %3933 = vmatmul.mubr.msk.f32.vlgmr.msra.gmra.mxu0 %vm29_vm0, %v1639_v54 }
 0x909   :  { %3950 = vmatpush3.msra.mxu0 %v4990_v63 }
 0x90a   :  { %v1641_v50 = vpop.permute.xlu0 %1640  ;;  %3951 = vmatprep.subr.mxu0 %v4996_v37 }
 0x90b   :  { %3935 = vmatprep.mubr.msk.f32.mxu0 %vm29_vm0, %v1641_v50  ;;  %3952 = vmatpush3.msra.mxu0 %v4996_v37 }
 0x90c   :  { %3953 = vmatprep.subr.mxu0 %v5004_v58 }
 0x90d   :  { %3954 = vmatpush3.msra.mxu0 %v5004_v58 }
 0x90e   :  { %v1609_v21 = vpop.permute.xlu0 %1608  ;;  %3955 = vmatprep.subr.mxu0 %v5011_v43 }
 0x90f   :  { %v1611_v0 = vmul.f32 %v4229_v41, %v1609_v21  ;;  %3956 = vmatpush3.msra.mxu0 %v5011_v43 }
 0x910   :  { %3974 = vmatprep.subr.mxu0 %v4990_v63 }
 0x911   :  { %1613 = vrot.lane.b32.xlu1 %v1611_v0, %s4438_s11 }
 0x93c   :  { %v1643_v57 = vpop.permute.xlu1 %1642 }
 0x93d   :  { %3936 = vmatmul.mubr.msk.f32.gmra.mxu0 %vm29_vm0, %v1643_v57 }
 0x983   :  { %v1614_v29 = vpop.permute.xlu1 %1613 }
 0x984   :  { %v1616_v22 = vadd.f32 %v1614_v29, %v4839_v27 }
 0x986   :  { %4230 = vtanh.f32 %v1616_v22 }
 0x993   :  { %v4231_v51 = vpop.eup %4230 }
 0x994   :  { %1620 = vrot.lane.b32.xlu0 %v4231_v51, %s4441_s21 }
 0x9c8   :  { %v3934_v62 = vpop.f32.mrf.mxu0 }
 0x9c9   :  { %v1738_v31 = vadd.f32 %v3934_v62, %v380_v39 }
 0x9ca   :  { %v1718_v46 = vpop.f32.mrf.mxu0 }
 0x9cb   :  { %v1737_v38 = vadd.f32 %v1718_v46, %v374_v35  ;;  %v3639_v29 = vmul.f32 -1.442695, %v1738_v31 }
 0x9cd   :  { %4232 = vtanh.f32 %v1737_v38  ;;  %v3638_v40 = vmul.f32 -1.442695, %v1737_v38 }
 0x9da   :  { %v4233_v55 = vpop.eup %4232 }
 0x9db   :  { %1853 = vrot.lane.b32.xlu0 %v4233_v55, %s4438_s11  ;;  %v5043_v55 = vld [vmem:[%s5486_s4 + $0x40] sm:$0xff] }
 0x9fd   :  { %v3937_v47 = vpop.f32.mrf.mxu0 }
 0x9fe   :  { %v1740_v17 = vadd.f32 %v3937_v47, %v392_v61 }
 0x9ff   :  { %v1728_v48 = vpop.f32.mrf.mxu0 }
 0xa00   :  { %v1739_v6 = vadd.f32 %v1728_v48, %v386_v42  ;;  %v3641_v22 = vmul.f32 -1.442695, %v1740_v17 }
 0xa02   :  { %4234 = vtanh.f32 %v1739_v6  ;;  %v3640_v57 = vmul.f32 -1.442695, %v1739_v6  ;;  %v5052_v6 = vld [vmem:[%s5486_s4 + $0x38] sm:$0xff] }
 0xa03   :  { %4236 = vtanh.f32 %v1738_v31 }
 0xa04   :  { %4238 = vtanh.f32 %v1740_v17 }
 0xa05   :  { %4240 = vpow2.f32 %v3638_v40 }
 0xa06   :  { %v1621_v59 = vpop.permute.xlu0 %1620 }
 0xa07   :  { %v1623_v45 = vmul.f32 %v1621_v59, %v1618_v32  ;;  %v5063_v32 = vld [vmem:[%s5486_s4 + $0x28] sm:$0xff] }
 0xa09   :  { %v5028_v36 = vadd.f32 %v1626_v34, %v1623_v45 }
 0xa0b   :  { %v1742_v56 = vrot.slane %v5028_v36, 4 }
 0xa0d   :  { %1743 = vrot.lane.b32.xlu1 %v1742_v56, %s4441_s21 }
 0xa0f   :  { %v4235_v60 = vpop.eup %4234 }
 0xa10   :  { %v4237_v26 = vpop.eup %4236  ;;  %1857 = vrot.lane.b32.xlu0 %v4235_v60, %s4438_s11 }
 0xa11   :  { %1855 = vrot.lane.b32.xlu1 %v4237_v26, %s4438_s11  ;;  %v4239_v1 = vpop.eup %4238 }
 0xa12   :  { %v4241_v54 = vpop.eup %4240 }
 0xa13   :  { %v1829_v50 = vadd.f32 1.0, %v4241_v54 }
 0xa15   :  { %1859 = vrot.lane.b32.xlu1 %v4239_v1, %s4438_s11  ;;  %4242 = vrcp.f32 %v1829_v50 }
 0xa16   :  { %4244 = vpow2.f32 %v3640_v57 }
 0xa17   :  { %4246 = vpow2.f32 %v3639_v29 }
 0xa18   :  { %4248 = vpow2.f32 %v3641_v22 }
 0xa22   :  { %v5035_v41 = vpop.eup %4242 }
 0xa23   :  { %v4245_v51 = vpop.eup %4244 }
 0xa24   :  { %v4247_v33 = vpop.eup %4246  ;;  %v1831_v14 = vadd.f32 1.0, %v4245_v51 }
 0xa25   :  { %v1830_v62 = vadd.f32 1.0, %v4247_v33  ;;  %v4249_v35 = vpop.eup %4248 }
 0xa26   :  { %4250 = vrcp.f32 %v1831_v14  ;;  %v1832_v46 = vadd.f32 1.0, %v4249_v35 }
 0xa27   :  { %4252 = vrcp.f32 %v1830_v62 }
 0xa28   :  { %4254 = vrcp.f32 %v1832_v46 }
 0xa33   :  { %v4251_v47 = vpop.eup %4250 }
 0xa34   :  { %v4253_v42 = vpop.eup %4252  ;;  %v1847_v60 = vmul.f32 %v4251_v47, %v4967_v53 }
 0xa35   :  { %v4255_v17 = vpop.eup %4254  ;;  %v1846_v1 = vmul.f32 %v4253_v42, %v4959_v30 }
 0xa4d   :  { %v1854_v21 = vpop.permute.xlu0 %1853 }
 0xa4e   :  { %v1865_v0 = vmul.f32 %v5035_v41, %v1854_v21 }
 0xa50   :  { %1873 = vrot.lane.b32.xlu0 %v1865_v0, %s4440_s16 }
 0xa7f   :  { %v1744_v38 = vpop.permute.xlu1 %1743 }
 0xa80   :  { %3947 = vmatmul.mubr.msk.f32.vlgmr.msra.gmra.mxu1 %vm29_vm0, %v1744_v38 }
 0xa81   :  { %3964 = vmatpush3.msra.mxu1 %v5043_v55  ;;  %3971 = vmatprep.mubr.msk.f32.mxu1 %vm4439_vm3, %v4437_v25 }
 0xa82   :  { %v1858_v39 = vpop.permute.xlu0 %1857  ;;  %3965 = vmatprep.subr.mxu1 %v4437_v25 }
 0xa83   :  { %v1867_v48 = vmul.f32 %v4251_v47, %v1858_v39  ;;  %v1856_v31 = vpop.permute.xlu1 %1855  ;;  %3966 = vmatpush3.msra.mxu1 %v5052_v6 }
 0xa84   :  { %v1866_v61 = vmul.f32 %v4253_v42, %v1856_v31  ;;  %3967 = vmatprep.subr.mxu1 %v4437_v25 }
 0xa85   :  { %1877 = vrot.lane.b32.xlu0 %v1867_v48, %s4440_s16  ;;  %3968 = vmatpush3.msra.mxu1 %v4778_v49  ;;  %v1845_v49 = vmul.f32 %v5035_v41, %v4963_v12  ;;  %v1848_v12 = vmul.f32 %v4255_v17, %v4974_v44 }
 0xa86   :  { %1875 = vrot.lane.b32.xlu1 %v1866_v61, %s4440_s16  ;;  %3969 = vmatprep.subr.mxu1 %v4437_v25 }
 0xa87   :  { %v1860_v52 = vpop.permute.xlu1 %1859  ;;  %3970 = vmatpush3.msra.mxu1 %v5063_v32 }
 0xa88   :  { %v1868_v59 = vmul.f32 %v4255_v17, %v1860_v52  ;;  %3988 = vmatprep.subr.mxu1 %v4437_v25 }
 0xa8a   :  { %1879 = vrot.lane.b32.xlu1 %v1868_v59, %s4440_s16 }
 0xac2   :  { %v1874_v34 = vpop.permute.xlu0 %1873 }
 0xac3   :  { %v5070_v45 = vadd.f32 %v1874_v34, %v1845_v49 }
 0xac5   :  { %4256 = vtanh.f32 %v5070_v45 }
 0xad2   :  { %v4257_v56 = vpop.eup %4256 }
 0xad3   :  { %1897 = vrot.lane.b32.xlu0 %v4257_v56, %s4438_s11 }
 0xaf7   :  { %v1878_v26 = vpop.permute.xlu0 %1877 }
 0xaf8   :  { %v5076_v40 = vadd.f32 %v1878_v26, %v1847_v60  ;;  %v1876_v54 = vpop.permute.xlu1 %1875 }
 0xaf9   :  { %v5078_v50 = vadd.f32 %v1876_v54, %v1846_v1  ;;  %v182_v1 = vsub.s32 4, %v4712_v4 }
 0xafa   :  { %4258 = vtanh.f32 %v5076_v40 }
 0xafb   :  { %4260 = vtanh.f32 %v5078_v50  ;;  %v183_v54 = vrot.slane %v4728_v11, %v182_v1 }
 0xafc   :  { %v1880_v21 = vpop.permute.xlu1 %1879 }
 0xafd   :  { %v5083_v0 = vadd.f32 %v1880_v21, %v1848_v12  ;;  %v461_v21 = vadd.f32 %v4708_v2, %v183_v54  ;;  %v479_v2 = vadd.f32 %v4742_v20, %v183_v54 }
 0xaff   :  { %4262 = vtanh.f32 %v5083_v0 }
 0xb07   :  { %v4259_v53 = vpop.eup %4258 }
 0xb08   :  { %v4261_v57 = vpop.eup %4260  ;;  %1901 = vrot.lane.b32.xlu0 %v4259_v53, %s4438_s11 }
 0xb09   :  { %1899 = vrot.lane.b32.xlu1 %v4261_v57, %s4438_s11 }
 0xb0c   :  { %v4263_v30 = vpop.eup %4262 }
 0xb0d   :  { %1903 = vrot.lane.b32.xlu1 %v4263_v30, %s4438_s11 }
 0xb40   :  { %v1813_v29 = vpop.f32.mrf.mxu1 }
 0xb41   :  { %v1814_v14 = vadd.f32 %v4832_v5, %v1813_v29  ;;  %v473_v29 = vadd.f32 %v4733_v15, %v183_v54 }
 0xb42   :  { %v3948_v22 = vpop.f32.mrf.mxu1 }
 0xb43   :  { %v1914_v38 = vrot.slane %v1814_v14, 2 }
 0xb45   :  { %v1898_v51 = vpop.permute.xlu0 %1897  ;;  %v1916_v31 = vadd.f32 %v1914_v38, %v4839_v27 }
 0xb46   :  { %v1909_v33 = vmul.f32 %v5035_v41, %v1898_v51 }
 0xb47   :  { %v3642_v5 = vmul.f32 -1.442695, %v1916_v31 }
 0xb48   :  { %1951 = vrot.lane.b32.xlu0 %v1909_v33, %s4440_s16 }
 0xb49   :  { %4264 = vpow2.f32 %v3642_v5 }
 0xb7a   :  { %v1902_v44 = vpop.permute.xlu0 %1901 }
 0xb7b   :  { %v1911_v62 = vmul.f32 %v4251_v47, %v1902_v44  ;;  %v1900_v35 = vpop.permute.xlu1 %1899  ;;  %v4265_v47 = vpop.eup %4264  ;;  %v467_v44 = vadd.f32 %v4724_v9, %v183_v54 }
 0xb7c   :  { %v1910_v46 = vmul.f32 %v4253_v42, %v1900_v35  ;;  %v1920_v42 = vadd.f32 1.0, %v4265_v47  ;;  %v1939_v35 = vrot.slane %v5028_v36, 6 }
 0xb7d   :  { %1955 = vrot.lane.b32.xlu0 %v1911_v62, %s4440_s16 }
 0xb7e   :  { %1953 = vrot.lane.b32.xlu1 %v1910_v46, %s4440_s16  ;;  %4266 = vrcp.f32 %v1920_v42 }
 0xb7f   :  { %v1904_v39 = vpop.permute.xlu1 %1903 }
 0xb80   :  { %v1912_v48 = vmul.f32 %v4255_v17, %v1904_v39 }
 0xb81   :  { %1923 = vrot.lane.b32.xlu0 %v1914_v38, %s4438_s11 }
 0xb82   :  { %1957 = vrot.lane.b32.xlu1 %v1912_v48, %s4440_s16 }
 0xb8b   :  { %v4267_v17 = vpop.eup %4266 }
 0xb8c   :  { %v1933_v15 = vsub.f32 1.0, %v4267_v17  ;;  %v1941_v38 = vmul.f32 %v4267_v17, %v1939_v35 }
 0xbba   :  { %v1952_v41 = vpop.permute.xlu0 %1951 }
 0xbbb   :  { %3957 = vmatprep.mubr.msk.f32.mxu0 %vm29_vm0, %v1952_v41 }
 0xbef   :  { %v1956_v61 = vpop.permute.xlu0 %1955 }
 0xbf0   :  { %v1954_v52 = vpop.permute.xlu1 %1953 }
 0xbf1   :  { %3958 = vmatmul.mubr.msk.f32.vlgmr.msra.gmra.mxu0 %vm29_vm0, %v1954_v52 }
 0xbf2   :  { %3960 = vmatprep.mubr.msk.f32.mxu0 %vm29_vm0, %v1956_v61  ;;  %3975 = vmatpush3.msra.mxu0 %v4990_v63 }
 0xbf3   :  { %v1924_v59 = vpop.permute.xlu0 %1923  ;;  %3976 = vmatprep.subr.mxu0 %v4996_v37 }
 0xbf4   :  { %v1926_v49 = vmul.f32 %v4267_v17, %v1924_v59  ;;  %v1958_v34 = vpop.permute.xlu1 %1957  ;;  %3977 = vmatpush3.msra.mxu0 %v4996_v37 }
 0xbf5   :  { %3961 = vmatmul.mubr.msk.f32.gmra.mxu0 %vm29_vm0, %v1958_v34  ;;  %3978 = vmatprep.subr.mxu0 %v5004_v58 }
 0xbf6   :  { %1928 = vrot.lane.b32.xlu1 %v1926_v49, %s4438_s11  ;;  %3979 = vmatpush3.msra.mxu0 %v5004_v58 }
 0xbf7   :  { %3980 = vmatprep.subr.mxu0 %v5011_v43 }
 0xbf8   :  { %3981 = vmatpush3.msra.mxu0 %v5011_v43 }
 0xbf9   :  { %3999 = vmatprep.subr.mxu0 %v4990_v63 }
 0xc68   :  { %v1929_v56 = vpop.permute.xlu1 %1928 }
 0xc69   :  { %v1931_v60 = vadd.f32 %v1929_v56, %v4839_v27 }
 0xc6b   :  { %4268 = vtanh.f32 %v1931_v60 }
 0xc78   :  { %v4269_v26 = vpop.eup %4268 }
 0xc79   :  { %1935 = vrot.lane.b32.xlu0 %v4269_v26, %s4441_s21 }
 0xcb1   :  { %v3959_v12 = vpop.f32.mrf.mxu0 }
 0xcb2   :  { %v2053_v14 = vadd.f32 %v3959_v12, %v467_v44 }
 0xcb3   :  { %v2033_v53 = vpop.f32.mrf.mxu0 }
 0xcb4   :  { %v2052_v57 = vadd.f32 %v2033_v53, %v461_v21  ;;  %v3649_v60 = vmul.f32 -1.442695, %v2053_v14 }
 0xcb5   :  { %v3962_v30 = vpop.f32.mrf.mxu0 }
 0xcb6   :  { %4270 = vtanh.f32 %v2052_v57  ;;  %v2055_v62 = vadd.f32 %v3962_v30, %v479_v2  ;;  %v3648_v36 = vmul.f32 -1.442695, %v2052_v57 }
 0xcb7   :  { %v2043_v22 = vpop.f32.mrf.mxu0 }
 0xcb8   :  { %v2054_v51 = vadd.f32 %v2043_v22, %v473_v29  ;;  %v3651_v26 = vmul.f32 -1.442695, %v2055_v62  ;;  %v5147_v22 = vld [vmem:[%s5486_s4 + $0x30] sm:$0xff] }
 0xcba   :  { %4272 = vtanh.f32 %v2054_v51  ;;  %v3650_v31 = vmul.f32 -1.442695, %v2054_v51 }
 0xcbb   :  { %4274 = vtanh.f32 %v2053_v14 }
 0xcbc   :  { %4276 = vtanh.f32 %v2055_v62 }
 0xcbd   :  { %4278 = vpow2.f32 %v3648_v36 }
 0xcbe   :  { %4280 = vpow2.f32 %v3650_v31 }
 0xcc3   :  { %v4271_v27 = vpop.eup %4270 }
 0xcc4   :  { %2168 = vrot.lane.b32.xlu0 %v4271_v27, %s4438_s11 }
 0xcc7   :  { %v4273_v33 = vpop.eup %4272 }
 0xcc8   :  { %2172 = vrot.lane.b32.xlu0 %v4273_v33, %s4438_s11  ;;  %v4275_v9 = vpop.eup %4274 }
 0xcc9   :  { %v4277_v20 = vpop.eup %4276 }
 0xcca   :  { %v4279_v5 = vpop.eup %4278 }
 0xccb   :  { %v2144_v47 = vadd.f32 1.0, %v4279_v5  ;;  %v4281_v42 = vpop.eup %4280 }
 0xccc   :  { %v2146_v61 = vadd.f32 1.0, %v4281_v42 }
 0xccd   :  { %4282 = vrcp.f32 %v2144_v47 }
 0xcce   :  { %4284 = vrcp.f32 %v2146_v61 }
 0xccf   :  { %4286 = vpow2.f32 %v3649_v60 }
 0xcd0   :  { %4288 = vpow2.f32 %v3651_v26 }
 0xcda   :  { %v5129_v52 = vpop.eup %4282 }
 0xcdb   :  { %v5133_v49 = vpop.eup %4284  ;;  %v2160_v44 = vmul.f32 %v5129_v52, %v5070_v45 }
 0xcdc   :  { %v4287_v1 = vpop.eup %4286  ;;  %v2162_v62 = vmul.f32 %v5133_v49, %v5076_v40 }
 0xcdd   :  { %v2145_v54 = vadd.f32 1.0, %v4287_v1  ;;  %v4289_v12 = vpop.eup %4288 }
 0xcde   :  { %v2147_v21 = vadd.f32 1.0, %v4289_v12 }
 0xcdf   :  { %4290 = vrcp.f32 %v2145_v54 }
 0xce0   :  { %4292 = vrcp.f32 %v2147_v21 }
 0xceb   :  { %v1936_v46 = vpop.permute.xlu0 %1935 }
 0xcec   :  { %v1938_v39 = vmul.f32 %v1936_v46, %v1933_v15  ;;  %v4291_v57 = vpop.eup %4290 }
 0xced   :  { %v4293_v51 = vpop.eup %4292  ;;  %v2161_v45 = vmul.f32 %v4291_v57, %v5078_v50 }
 0xcee   :  { %v5121_v48 = vadd.f32 %v1941_v38, %v1938_v39  ;;  %v2163_v40 = vmul.f32 %v4293_v51, %v5083_v0 }
 0xcf0   :  { %v2057_v41 = vrot.slane %v5121_v48, 6 }
 0xcf2   :  { %2058 = vrot.lane.b32.xlu1 %v2057_v41, %s4441_s21 }
 0xcf6   :  { %2170 = vrot.lane.b32.xlu1 %v4275_v9, %s4438_s11 }
 0xcfa   :  { %2174 = vrot.lane.b32.xlu1 %v4277_v20, %s4438_s11 }
 0xd36   :  { %v2169_v17 = vpop.permute.xlu0 %2168 }
 0xd37   :  { %v2180_v59 = vmul.f32 %v5129_v52, %v2169_v17 }
 0xd39   :  { %2188 = vrot.lane.b32.xlu0 %v2180_v59, %s4440_s16  ;;  %v5184_v59 = vld [vmem:[%s5486_s4 + $0x50] ss:$0 sm:$0xff] }
 0xd3a   :  { %v2173_v34 = vpop.permute.xlu0 %2172 }
 0xd3b   :  { %v2182_v56 = vmul.f32 %v5133_v49, %v2173_v34 }
 0xd3d   :  { %2192 = vrot.lane.b32.xlu0 %v2182_v56, %s4440_s16 }
 0xd64   :  { %v2059_v53 = vpop.permute.xlu1 %2058 }
 0xd65   :  { %3972 = vmatmul.mubr.msk.f32.vlgmr.msra.gmra.mxu1 %vm29_vm0, %v2059_v53 }
 0xd66   :  { %3989 = vmatpush3.msra.mxu1 %v5043_v55  ;;  %3996 = vmatprep.mubr.msk.f32.mxu1 %vm4439_vm3, %v4437_v25 }
 0xd67   :  { %3990 = vmatprep.subr.mxu1 %v4437_v25 }
 0xd68   :  { %v2171_v30 = vpop.permute.xlu1 %2170  ;;  %3991 = vmatpush3.msra.mxu1 %v5052_v6 }
 0xd69   :  { %v2181_v29 = vmul.f32 %v4291_v57, %v2171_v30  ;;  %3992 = vmatprep.subr.mxu1 %v4437_v25 }
 0xd6a   :  { %3993 = vmatpush3.msra.mxu1 %v5147_v22 }
 0xd6b   :  { %2190 = vrot.lane.b32.xlu1 %v2181_v29, %s4440_s16  ;;  %3994 = vmatprep.subr.mxu1 %v4437_v25 }
 0xd6c   :  { %v2175_v27 = vpop.permute.xlu1 %2174  ;;  %3995 = vmatpush3.msra.mxu1 %v5063_v32 }
 0xd6d   :  { %v2183_v33 = vmul.f32 %v4293_v51, %v2175_v27  ;;  %4013 = vmatprep.subr.mxu1 %v4437_v25 }
 0xd6f   :  { %2194 = vrot.lane.b32.xlu1 %v2183_v33, %s4440_s16 }
 0xdab   :  { %v2189_v14 = vpop.permute.xlu0 %2188 }
 0xdac   :  { %v5157_v2 = vadd.f32 %v2189_v14, %v2160_v44 }
 0xdae   :  { %4294 = vtanh.f32 %v5157_v2 }
 0xdaf   :  { %v2193_v35 = vpop.permute.xlu0 %2192 }
 0xdb0   :  { %v5162_v15 = vadd.f32 %v2193_v35, %v2162_v62  ;;  %v186_v62 = vsub.s32 5, %v4712_v4 }
 0xdb2   :  { %4296 = vtanh.f32 %v5162_v15  ;;  %v187_v35 = vrot.slane %v4728_v11, %v186_v62 }
 0xdbb   :  { %v4295_v46 = vpop.eup %4294 }
 0xdbc   :  { %2212 = vrot.lane.b32.xlu0 %v4295_v46, %s4438_s11 }
 0xdbf   :  { %v4297_v38 = vpop.eup %4296 }
 0xdc0   :  { %2216 = vrot.lane.b32.xlu0 %v4297_v38, %s4438_s11  ;;  %v463_v38 = vadd.f32 %v4720_v7, %v187_v35 }
 0xddd   :  { %v2191_v39 = vpop.permute.xlu1 %2190 }
 0xdde   :  { %v5168_v9 = vadd.f32 %v2191_v39, %v2161_v45  ;;  %v469_v39 = vadd.f32 %v4731_v13, %v187_v35 }
 0xde0   :  { %4298 = vtanh.f32 %v5168_v9 }
 0xde1   :  { %v2195_v20 = vpop.permute.xlu1 %2194 }
 0xde2   :  { %v5172_v36 = vadd.f32 %v2195_v20, %v2163_v40 }
 0xde4   :  { %4300 = vtanh.f32 %v5172_v36 }
 0xded   :  { %v4299_v31 = vpop.eup %4298 }
 0xdee   :  { %2214 = vrot.lane.b32.xlu1 %v4299_v31, %s4438_s11  ;;  %v475_v31 = vadd.f32 %v4738_v18, %v187_v35 }
 0xdf1   :  { %v4301_v5 = vpop.eup %4300 }
 0xdf2   :  { %2218 = vrot.lane.b32.xlu1 %v4301_v5, %s4438_s11 }
 0xe25   :  { %v2128_v47 = vpop.f32.mrf.mxu1 }
 0xe26   :  { %v2129_v34 = vadd.f32 %v5184_v59, %v2128_v47 }
 0xe27   :  { %v3973_v50 = vpop.f32.mrf.mxu1 }
 0xe28   :  { %v481_v50 = vadd.f32 %v4744_v23, %v187_v35 }
 0xe2e   :  { %v2213_v42 = vpop.permute.xlu0 %2212 }
 0xe2f   :  { %v2224_v61 = vmul.f32 %v5129_v52, %v2213_v42 }
 0xe31   :  { %2263 = vrot.lane.b32.xlu0 %v2224_v61, %s4440_s16 }
 0xe32   :  { %v2217_v17 = vpop.permute.xlu0 %2216 }
 0xe33   :  { %v2226_v0 = vmul.f32 %v5133_v49, %v2217_v17  ;;  %v2228_v49 = vadd.f32 %v2129_v34, %v4818_v24 }
 0xe35   :  { %2267 = vrot.lane.b32.xlu0 %v2226_v0, %s4440_s16  ;;  %v3652_v1 = vmul.f32 -1.442695, %v2228_v49 }
 0xe37   :  { %4302 = vpow2.f32 %v3652_v1 }
 0xe39   :  { %2236 = vrot.lane.b32.xlu0 %v2129_v34, %s4438_s11 }
 0xe44   :  { %v4303_v54 = vpop.eup %4302 }
 0xe45   :  { %v2232_v12 = vadd.f32 1.0, %v4303_v54 }
 0xe47   :  { %4304 = vrcp.f32 %v2232_v12 }
 0xe54   :  { %v4305_v30 = vpop.eup %4304 }
 0xe55   :  { %v2246_v17 = vsub.f32 1.0, %v4305_v30  ;;  %v2253_v7 = vmul.f32 %v4305_v30, %v2057_v41 }
 0xe60   :  { %v2215_v56 = vpop.permute.xlu1 %2214 }
 0xe61   :  { %v2225_v60 = vmul.f32 %v4291_v57, %v2215_v56 }
 0xe63   :  { %2265 = vrot.lane.b32.xlu1 %v2225_v60, %s4440_s16 }
 0xe64   :  { %v2219_v52 = vpop.permute.xlu1 %2218 }
 0xe65   :  { %v2227_v26 = vmul.f32 %v4293_v51, %v2219_v52 }
 0xe67   :  { %2269 = vrot.lane.b32.xlu1 %v2227_v26, %s4440_s16 }
 0xea3   :  { %v2264_v21 = vpop.permute.xlu0 %2263 }
 0xea4   :  { %3982 = vmatprep.mubr.msk.f32.mxu0 %vm29_vm0, %v2264_v21 }
 0xea7   :  { %v2268_v53 = vpop.permute.xlu0 %2267 }
 0xeab   :  { %v2237_v29 = vpop.permute.xlu0 %2236 }
 0xeac   :  { %v2239_v57 = vmul.f32 %v4305_v30, %v2237_v29 }
 0xeae   :  { %2241 = vrot.lane.b32.xlu1 %v2239_v57, %s4438_s11 }
 0xed5   :  { %v2266_v27 = vpop.permute.xlu1 %2265 }
 0xed6   :  { %3983 = vmatmul.mubr.msk.f32.vlgmr.msra.gmra.mxu0 %vm29_vm0, %v2266_v27 }
 0xed7   :  { %3985 = vmatprep.mubr.msk.f32.mxu0 %vm29_vm0, %v2268_v53  ;;  %4000 = vmatpush3.msra.mxu0 %v4990_v63 }
 0xed8   :  { %4001 = vmatprep.subr.mxu0 %v4996_v37 }
 0xed9   :  { %v2270_v51 = vpop.permute.xlu1 %2269  ;;  %4002 = vmatpush3.msra.mxu0 %v4996_v37 }
 0xeda   :  { %3986 = vmatmul.mubr.msk.f32.gmra.mxu0 %vm29_vm0, %v2270_v51  ;;  %4003 = vmatprep.subr.mxu0 %v5004_v58 }
 0xedb   :  { %4004 = vmatpush3.msra.mxu0 %v5004_v58 }
 0xedc   :  { %4005 = vmatprep.subr.mxu0 %v5011_v43 }
 0xedd   :  { %4006 = vmatpush3.msra.mxu0 %v5011_v43 }
 0xede   :  { %4024 = vmatprep.subr.mxu0 %v4990_v63 }
 0xf20   :  { %v2242_v33 = vpop.permute.xlu1 %2241 }
 0xf21   :  { %v2244_v44 = vadd.f32 %v2242_v33, %v4818_v24 }
 0xf23   :  { %4306 = vtanh.f32 %v2244_v44 }
 0xf30   :  { %v4307_v14 = vpop.eup %4306 }
 0xf31   :  { %2248 = vrot.lane.b32.xlu0 %v4307_v14, %s4441_s21 }
 0xf96   :  { %v3984_v46 = vpop.f32.mrf.mxu0 }
 0xf97   :  { %v2365_v5 = vadd.f32 %v3984_v46, %v469_v39 }
 0xf98   :  { %v2345_v45 = vpop.f32.mrf.mxu0 }
 0xf99   :  { %v2364_v40 = vadd.f32 %v2345_v45, %v463_v38  ;;  %v3659_v41 = vmul.f32 -1.442695, %v2365_v5 }
 0xf9a   :  { %v3987_v20 = vpop.f32.mrf.mxu0 }
 0xf9b   :  { %4308 = vtanh.f32 %v2364_v40  ;;  %v2367_v61 = vadd.f32 %v3987_v20, %v481_v50  ;;  %v3658_v48 = vmul.f32 -1.442695, %v2364_v40 }
 0xf9c   :  { %v2355_v47 = vpop.f32.mrf.mxu0  ;;  %4310 = vtanh.f32 %v2365_v5 }
 0xf9d   :  { %v2366_v42 = vadd.f32 %v2355_v47, %v475_v31  ;;  %v3661_v26 = vmul.f32 -1.442695, %v2367_v61 }
 0xf9f   :  { %4312 = vtanh.f32 %v2366_v42  ;;  %v3660_v52 = vmul.f32 -1.442695, %v2366_v42 }
 0xfa0   :  { %4314 = vtanh.f32 %v2367_v61 }
 0xfa1   :  { %4316 = vpow2.f32 %v3658_v48 }
 0xfa2   :  { %4318 = vpow2.f32 %v3659_v41 }
 0xfa3   :  { %v2249_v0 = vpop.permute.xlu0 %2248  ;;  %4320 = vpow2.f32 %v3660_v52 }
 0xfa4   :  { %v2251_v13 = vmul.f32 %v2249_v0, %v2246_v17  ;;  %4322 = vpow2.f32 %v3661_v26 }
 0xfa6   :  { %v5214_v34 = vadd.f32 %v2253_v7, %v2251_v13 }
 0xfa8   :  { %v4309_v56 = vpop.eup %4308  ;;  %2369 = vrot.lane.b32.xlu1 %v5214_v34, %s4441_s21 }
 0xfa9   :  { %2479 = vrot.lane.b32.xlu0 %v4309_v56, %s4438_s11  ;;  %v4311_v18 = vpop.eup %4310 }
 0xfac   :  { %v4313_v23 = vpop.eup %4312  ;;  %2481 = vrot.lane.b32.xlu1 %v4311_v18, %s4438_s11 }
 0xfad   :  { %2483 = vrot.lane.b32.xlu0 %v4313_v23, %s4438_s11  ;;  %v4315_v60 = vpop.eup %4314 }
 0xfae   :  { %v4317_v49 = vpop.eup %4316 }
 0xfaf   :  { %v4319_v1 = vpop.eup %4318  ;;  %v2455_v54 = vadd.f32 1.0, %v4317_v49 }
 0xfb0   :  { %2485 = vrot.lane.b32.xlu1 %v4315_v60, %s4438_s11  ;;  %v4321_v12 = vpop.eup %4320  ;;  %v2456_v21 = vadd.f32 1.0, %v4319_v1 }
 0xfb1   :  { %v4323_v53 = vpop.eup %4322  ;;  %4324 = vrcp.f32 %v2455_v54  ;;  %v2457_v30 = vadd.f32 1.0, %v4321_v12 }
 0xfb2   :  { %4326 = vrcp.f32 %v2456_v21  ;;  %v2458_v29 = vadd.f32 1.0, %v4323_v53 }
 0xfb3   :  { %4328 = vrcp.f32 %v2457_v30 }
 0xfb4   :  { %4330 = vrcp.f32 %v2458_v29 }
 0xfbe   :  { %v4325_v27 = vpop.eup %4324 }
 0xfbf   :  { %v4327_v44 = vpop.eup %4326  ;;  %v2471_v20 = vmul.f32 %v4325_v27, %v5157_v2 }
 0xfc0   :  { %v4329_v62 = vpop.eup %4328  ;;  %v2472_v47 = vmul.f32 %v4327_v44, %v5168_v9 }
 0xfc1   :  { %v4331_v45 = vpop.eup %4330  ;;  %v2473_v42 = vmul.f32 %v4329_v62, %v5162_v15 }
 0xfc2   :  { %v2474_v7 = vmul.f32 %v4331_v45, %v5172_v36 }
0x101a   :  { %v2370_v57 = vpop.permute.xlu1 %2369 }
0x101b   :  { %3997 = vmatmul.mubr.msk.f32.vlgmr.msra.gmra.mxu1 %vm29_vm0, %v2370_v57  ;;  %v2480_v51 = vpop.permute.xlu0 %2479 }
0x101c   :  { %v2491_v33 = vmul.f32 %v4325_v27, %v2480_v51  ;;  %4014 = vmatpush3.msra.mxu1 %v5043_v55  ;;  %4021 = vmatprep.mubr.msk.f32.mxu1 %vm4439_vm3, %v4437_v25 }
0x101d   :  { %4015 = vmatprep.subr.mxu1 %v4437_v25 }
0x101e   :  { %v2482_v14 = vpop.permute.xlu1 %2481  ;;  %2499 = vrot.lane.b32.xlu0 %v2491_v33, %s4440_s16  ;;  %4016 = vmatpush3.msra.mxu1 %v5052_v6 }
0x101f   :  { %v2492_v35 = vmul.f32 %v4327_v44, %v2482_v14  ;;  %v2484_v46 = vpop.permute.xlu0 %2483  ;;  %4017 = vmatprep.subr.mxu1 %v4437_v25 }
0x1020   :  { %v2493_v38 = vmul.f32 %v4329_v62, %v2484_v46  ;;  %4018 = vmatpush3.msra.mxu1 %v5147_v22 }
0x1021   :  { %2501 = vrot.lane.b32.xlu1 %v2492_v35, %s4440_s16  ;;  %4019 = vmatprep.subr.mxu1 %v4437_v25 }
0x1022   :  { %v2486_v39 = vpop.permute.xlu1 %2485  ;;  %2503 = vrot.lane.b32.xlu0 %v2493_v38, %s4440_s16  ;;  %4020 = vmatpush3.msra.mxu1 %v5063_v32  ;;  %v190_v38 = vsub.s32 6, %v4712_v4 }
0x1023   :  { %v2494_v40 = vmul.f32 %v4331_v45, %v2486_v39  ;;  %4038 = vmatprep.subr.mxu1 %v4437_v25 }
0x1025   :  { %2505 = vrot.lane.b32.xlu1 %v2494_v40, %s4440_s16 }
0x1090   :  { %v2500_v31 = vpop.permute.xlu0 %2499 }
0x1091   :  { %v5238_v5 = vadd.f32 %v2500_v31, %v2471_v20 }
0x1093   :  { %4332 = vtanh.f32 %v5238_v5  ;;  %v2502_v50 = vpop.permute.xlu1 %2501 }
0x1094   :  { %v5243_v61 = vadd.f32 %v2502_v50, %v2472_v47  ;;  %v2504_v17 = vpop.permute.xlu0 %2503 }
0x1095   :  { %v5245_v0 = vadd.f32 %v2504_v17, %v2473_v42 }
0x1096   :  { %4334 = vtanh.f32 %v5243_v61 }
0x1097   :  { %4336 = vtanh.f32 %v5245_v0  ;;  %v2506_v2 = vpop.permute.xlu1 %2505 }
0x1098   :  { %v5250_v13 = vadd.f32 %v2506_v2, %v2474_v7 }
0x109a   :  { %4338 = vtanh.f32 %v5250_v13 }
0x10a0   :  { %v4333_v9 = vpop.eup %4332 }
0x10a1   :  { %2523 = vrot.lane.b32.xlu0 %v4333_v9, %s4438_s11 }
0x10a3   :  { %v4335_v15 = vpop.eup %4334 }
0x10a4   :  { %v4337_v56 = vpop.eup %4336  ;;  %2525 = vrot.lane.b32.xlu1 %v4335_v15, %s4438_s11  ;;  %v2565_v15 = vrot.slane %v5214_v34, 6 }
0x10a5   :  { %2527 = vrot.lane.b32.xlu0 %v4337_v56, %s4438_s11 }
0x10a7   :  { %v4339_v18 = vpop.eup %4338 }
0x10a8   :  { %2529 = vrot.lane.b32.xlu1 %v4339_v18, %s4438_s11 }
0x10db   :  { %v2439_v36 = vpop.f32.mrf.mxu1 }
0x10dc   :  { %v2440_v49 = vadd.f32 %v5184_v59, %v2439_v36 }
0x10dd   :  { %v3998_v23 = vpop.f32.mrf.mxu1 }
0x10de   :  { %v2540_v21 = vrot.slane %v2440_v49, 6 }
0x10e0   :  { %v2542_v53 = vadd.f32 %v2540_v21, %v4818_v24 }
0x10e2   :  { %v3662_v30 = vmul.f32 -1.442695, %v2542_v53 }
0x10e4   :  { %4340 = vpow2.f32 %v3662_v30 }
0x10f1   :  { %v4341_v29 = vpop.eup %4340 }
0x10f2   :  { %v2546_v57 = vadd.f32 1.0, %v4341_v29 }
0x10f4   :  { %4342 = vrcp.f32 %v2546_v57 }
0x1101   :  { %v4343_v14 = vpop.eup %4342 }
0x1102   :  { %v2567_v18 = vmul.f32 %v4343_v14, %v2565_v15 }
0x1113   :  { %v2524_v60 = vpop.permute.xlu0 %2523 }
0x1114   :  { %v2535_v48 = vmul.f32 %v4325_v27, %v2524_v60 }
0x1116   :  { %v2526_v41 = vpop.permute.xlu1 %2525  ;;  %2577 = vrot.lane.b32.xlu0 %v2535_v48, %s4440_s16 }
0x1117   :  { %v2536_v52 = vmul.f32 %v4327_v44, %v2526_v41  ;;  %v2528_v26 = vpop.permute.xlu0 %2527 }
0x1118   :  { %v2537_v1 = vmul.f32 %v4329_v62, %v2528_v26 }
0x1119   :  { %2579 = vrot.lane.b32.xlu1 %v2536_v52, %s4440_s16 }
0x111a   :  { %v2530_v54 = vpop.permute.xlu1 %2529  ;;  %2581 = vrot.lane.b32.xlu0 %v2537_v1, %s4440_s16 }
0x111b   :  { %v2538_v12 = vmul.f32 %v4331_v45, %v2530_v54  ;;  %v191_v45 = vrot.slane %v4728_v11, %v190_v38 }
0x111d   :  { %2583 = vrot.lane.b32.xlu1 %v2538_v12, %s4440_s16  ;;  %v550_v39 = vadd.f32 %v4710_v3, %v191_v45  ;;  %v556_v7 = vadd.f32 %v4726_v10, %v191_v45  ;;  %v568_v3 = vadd.f32 %v4746_v28, %v191_v45 }
0x111e   :  { %2549 = vrot.lane.b32.xlu0 %v2540_v21, %s4438_s11 }
0x1188   :  { %v2578_v27 = vpop.permute.xlu0 %2577 }
0x1189   :  { %4007 = vmatprep.mubr.msk.f32.mxu0 %vm29_vm0, %v2578_v27 }
0x118b   :  { %v2580_v51 = vpop.permute.xlu1 %2579 }
0x118c   :  { %4008 = vmatmul.mubr.msk.f32.vlgmr.msra.gmra.mxu0 %vm29_vm0, %v2580_v51  ;;  %v2582_v33 = vpop.permute.xlu0 %2581 }
0x118d   :  { %4010 = vmatprep.mubr.msk.f32.mxu0 %vm29_vm0, %v2582_v33  ;;  %4025 = vmatpush3.msra.mxu0 %v4990_v63 }
0x118e   :  { %4026 = vmatprep.subr.mxu0 %v4996_v37 }
0x118f   :  { %v2584_v44 = vpop.permute.xlu1 %2583  ;;  %4027 = vmatpush3.msra.mxu0 %v4996_v37 }
0x1190   :  { %4011 = vmatmul.mubr.msk.f32.gmra.mxu0 %vm29_vm0, %v2584_v44  ;;  %v2550_v62 = vpop.permute.xlu0 %2549  ;;  %4028 = vmatprep.subr.mxu0 %v5004_v58 }
0x1191   :  { %v2552_v35 = vmul.f32 %v4343_v14, %v2550_v62  ;;  %4029 = vmatpush3.msra.mxu0 %v5004_v58 }
0x1192   :  { %4030 = vmatprep.subr.mxu0 %v5011_v43 }
0x1193   :  { %2554 = vrot.lane.b32.xlu1 %v2552_v35, %s4438_s11  ;;  %4031 = vmatpush3.msra.mxu0 %v5011_v43  ;;  %v562_v43 = vadd.f32 %v4735_v16, %v191_v45  ;;  %v2559_v16 = vsub.f32 1.0, %v4343_v14 }
0x1194   :  { %4049 = vmatprep.subr.mxu0 %v4437_v25 }
0x1205   :  { %v2555_v63 = vpop.permute.xlu1 %2554 }
0x1206   :  { %v2557_v37 = vadd.f32 %v2555_v63, %v4818_v24 }
0x1208   :  { %4344 = vtanh.f32 %v2557_v37 }
0x1215   :  { %v4345_v46 = vpop.eup %4344 }
0x1216   :  { %2561 = vrot.lane.b32.xlu0 %v4345_v46, %s4441_s21 }
0x124c   :  { %v4009_v58 = vpop.f32.mrf.mxu0 }
0x124d   :  { %v2679_v2 = vadd.f32 %v4009_v58, %v556_v7 }
0x124e   :  { %v2659_v40 = vpop.f32.mrf.mxu0 }
0x124f   :  { %v2678_v20 = vadd.f32 %v2659_v40, %v550_v39  ;;  %v3669_v29 = vmul.f32 -1.442695, %v2679_v2 }
0x1250   :  { %v4012_v31 = vpop.f32.mrf.mxu0 }
0x1251   :  { %4346 = vtanh.f32 %v2678_v20  ;;  %v2681_v9 = vadd.f32 %v4012_v31, %v568_v3  ;;  %v3668_v28 = vmul.f32 -1.442695, %v2678_v20 }
0x1252   :  { %v2669_v47 = vpop.f32.mrf.mxu0 }
0x1253   :  { %v2680_v50 = vadd.f32 %v2669_v47, %v562_v43  ;;  %v3671_v57 = vmul.f32 -1.442695, %v2681_v9 }
0x1255   :  { %4348 = vtanh.f32 %v2680_v50  ;;  %v3670_v34 = vmul.f32 -1.442695, %v2680_v50 }
0x1256   :  { %4350 = vtanh.f32 %v2679_v2 }
0x1257   :  { %4352 = vtanh.f32 %v2681_v9 }
0x1258   :  { %4354 = vpow2.f32 %v3668_v28 }
0x1259   :  { %4356 = vpow2.f32 %v3670_v34 }
0x125e   :  { %v4347_v42 = vpop.eup %4346 }
0x125f   :  { %2794 = vrot.lane.b32.xlu0 %v4347_v42, %s4438_s11 }
0x1262   :  { %v4349_v17 = vpop.eup %4348 }
0x1263   :  { %2798 = vrot.lane.b32.xlu0 %v4349_v17, %s4438_s11  ;;  %v4351_v48 = vpop.eup %4350 }
0x1264   :  { %v4353_v10 = vpop.eup %4352 }
0x1265   :  { %v4355_v41 = vpop.eup %4354 }
0x1266   :  { %v2770_v52 = vadd.f32 1.0, %v4355_v41  ;;  %v4357_v26 = vpop.eup %4356 }
0x1267   :  { %v2772_v49 = vadd.f32 1.0, %v4357_v26 }
0x1268   :  { %4358 = vrcp.f32 %v2770_v52 }
0x1269   :  { %4360 = vrcp.f32 %v2772_v49 }
0x126a   :  { %4362 = vpow2.f32 %v3669_v29 }
0x126b   :  { %4364 = vpow2.f32 %v3671_v57 }
0x1275   :  { %v5294_v1 = vpop.eup %4358 }
0x1276   :  { %v5298_v21 = vpop.eup %4360 }
0x1277   :  { %v4363_v27 = vpop.eup %4362 }
0x1278   :  { %v2771_v51 = vadd.f32 1.0, %v4363_v27  ;;  %v4365_v33 = vpop.eup %4364 }
0x1279   :  { %v2773_v44 = vadd.f32 1.0, %v4365_v33 }
0x127a   :  { %4366 = vrcp.f32 %v2771_v51 }
0x127b   :  { %4368 = vrcp.f32 %v2773_v44 }
0x1287   :  { %v4367_v62 = vpop.eup %4366 }
0x1288   :  { %v2562_v56 = vpop.permute.xlu0 %2561  ;;  %v4369_v37 = vpop.eup %4368 }
0x1289   :  { %v2564_v36 = vmul.f32 %v2562_v56, %v2559_v16  ;;  %v2789_v43 = vmul.f32 %v4369_v37, %v5250_v13 }
0x128b   :  { %v5288_v23 = vadd.f32 %v2567_v18, %v2564_v36 }
0x128d   :  { %v2683_v60 = vrot.slane %v5288_v23, 2 }
0x128f   :  { %2684 = vrot.lane.b32.xlu1 %v2683_v60, %s4441_s21 }
0x1293   :  { %2796 = vrot.lane.b32.xlu1 %v4351_v48, %s4438_s11 }
0x1297   :  { %2800 = vrot.lane.b32.xlu1 %v4353_v10, %s4438_s11 }
0x12d1   :  { %v2795_v54 = vpop.permute.xlu0 %2794 }
0x12d2   :  { %v2806_v12 = vmul.f32 %v5294_v1, %v2795_v54 }
0x12d4   :  { %2814 = vrot.lane.b32.xlu0 %v2806_v12, %s4440_s16 }
0x12d5   :  { %v2799_v53 = vpop.permute.xlu0 %2798 }
0x12d6   :  { %v2808_v30 = vmul.f32 %v5298_v21, %v2799_v53 }
0x12d8   :  { %2818 = vrot.lane.b32.xlu0 %v2808_v30, %s4440_s16  ;;  %v194_v30 = vsub.s32 7, %v4712_v4 }
0x12da   :  { %v195_v29 = vrot.slane %v4728_v11, %v194_v30 }
0x12dc   :  { %v552_v27 = vadd.f32 %v4722_v8, %v195_v29 }
0x1301   :  { %v2685_v14 = vpop.permute.xlu1 %2684 }
0x1302   :  { %4022 = vmatmul.mubr.msk.f32.vlgmr.msra.gmra.mxu1 %vm29_vm0, %v2685_v14  ;;  %v564_v14 = vadd.f32 %v4740_v19, %v195_v29 }
0x1303   :  { %4039 = vmatpush3.msra.mxu1 %v5043_v55  ;;  %4046 = vmatprep.mubr.msk.f32.mxu1 %vm4439_vm3, %v4437_v25 }
0x1304   :  { %4040 = vmatprep.subr.mxu1 %v4437_v25 }
0x1305   :  { %v2797_v35 = vpop.permute.xlu1 %2796  ;;  %4041 = vmatpush3.msra.mxu1 %v5052_v6  ;;  %v2786_v6 = vmul.f32 %v5294_v1, %v5238_v5  ;;  %v2787_v5 = vmul.f32 %v4367_v62, %v5243_v61 }
0x1306   :  { %v2807_v63 = vmul.f32 %v4367_v62, %v2797_v35  ;;  %4042 = vmatprep.subr.mxu1 %v4437_v25 }
0x1307   :  { %4043 = vmatpush3.msra.mxu1 %v5147_v22  ;;  %v2788_v22 = vmul.f32 %v5298_v21, %v5245_v0 }
0x1308   :  { %2816 = vrot.lane.b32.xlu1 %v2807_v63, %s4440_s16  ;;  %4044 = vmatprep.subr.mxu1 %v4437_v25  ;;  %v2880_v63 = vrot.slane %v5288_v23, 6 }
0x1309   :  { %v2801_v55 = vpop.permute.xlu1 %2800  ;;  %4045 = vmatpush3.msra.mxu1 %v5063_v32 }
0x130a   :  { %v2809_v46 = vmul.f32 %v4369_v37, %v2801_v55  ;;  %4060 = vmatprep.subr.mxu1 %v4437_v25 }
0x130c   :  { %2820 = vrot.lane.b32.xlu1 %v2809_v46, %s4440_s16 }
0x1346   :  { %v2815_v38 = vpop.permute.xlu0 %2814 }
0x1347   :  { %v5317_v45 = vadd.f32 %v2815_v38, %v2786_v6 }
0x1349   :  { %4370 = vtanh.f32 %v5317_v45 }
0x134a   :  { %v2819_v58 = vpop.permute.xlu0 %2818 }
0x134b   :  { %v5322_v39 = vadd.f32 %v2819_v58, %v2788_v22 }
0x134d   :  { %4372 = vtanh.f32 %v5322_v39 }
0x1356   :  { %v4371_v32 = vpop.eup %4370 }
0x1357   :  { %2838 = vrot.lane.b32.xlu0 %v4371_v32, %s4438_s11 }
0x135a   :  { %v4373_v40 = vpop.eup %4372 }
0x135b   :  { %2842 = vrot.lane.b32.xlu0 %v4373_v40, %s4438_s11 }
0x137a   :  { %v2817_v20 = vpop.permute.xlu1 %2816 }
0x137b   :  { %v2827_v31 = vadd.f32 %v2817_v20, %v2787_v5 }
0x137d   :  { %4374 = vtanh.f32 %v2827_v31 }
0x137e   :  { %v2821_v47 = vpop.permute.xlu1 %2820 }
0x137f   :  { %v2829_v0 = vadd.f32 %v2821_v47, %v2789_v43 }
0x1381   :  { %4376 = vtanh.f32 %v2829_v0 }
0x138a   :  { %v4375_v50 = vpop.eup %4374 }
0x138b   :  { %2840 = vrot.lane.b32.xlu1 %v4375_v50, %s4438_s11 }
0x138e   :  { %v4377_v42 = vpop.eup %4376 }
0x138f   :  { %2844 = vrot.lane.b32.xlu1 %v4377_v42, %s4438_s11 }
0x13c2   :  { %v2754_v17 = vpop.f32.mrf.mxu1 }
0x13c3   :  { %v2755_v9 = vadd.f32 %v5184_v59, %v2754_v17 }
0x13c4   :  { %v4023_v7 = vpop.f32.mrf.mxu1 }
0x13c5   :  { %v2855_v15 = vrot.slane %v2755_v9, 4 }
0x13c7   :  { %v2857_v60 = vadd.f32 %v2855_v15, %v4818_v24 }
0x13c9   :  { %v2839_v2 = vpop.permute.xlu0 %2838  ;;  %v3672_v48 = vmul.f32 -1.442695, %v2857_v60 }
0x13ca   :  { %v2850_v3 = vmul.f32 %v5294_v1, %v2839_v2 }
0x13cb   :  { %4378 = vpow2.f32 %v3672_v48 }
0x13cc   :  { %2890 = vrot.lane.b32.xlu0 %v2850_v3, %s4440_s16 }
0x13cd   :  { %v2843_v61 = vpop.permute.xlu0 %2842 }
0x13ce   :  { %v2852_v13 = vmul.f32 %v5298_v21, %v2843_v61 }
0x13d0   :  { %2894 = vrot.lane.b32.xlu0 %v2852_v13, %s4440_s16 }
0x13d4   :  { %2864 = vrot.lane.b32.xlu0 %v2855_v15, %s4438_s11  ;;  %v3150_v15 = vld [vmem:[%s5486_s4 + $0x70] sm:$0xff] }
0x13d8   :  { %v4379_v10 = vpop.eup %4378 }
0x13d9   :  { %v2861_v28 = vadd.f32 1.0, %v4379_v10 }
0x13db   :  { %4380 = vrcp.f32 %v2861_v28 }
0x13e8   :  { %v4381_v52 = vpop.eup %4380 }
0x13e9   :  { %v2882_v46 = vmul.f32 %v4381_v52, %v2880_v63  ;;  %v3237_v63 = vld [vmem:[%s5486_s4 + $0x88] sm:$0xff] }
0x13fd   :  { %v2841_v16 = vpop.permute.xlu1 %2840 }
0x13fe   :  { %v2851_v56 = vmul.f32 %v4367_v62, %v2841_v16  ;;  %v3147_v16 = vld [vmem:[%s5486_s4 + $0x58] sm:$0xff] }
0x1400   :  { %2892 = vrot.lane.b32.xlu1 %v2851_v56, %s4440_s16 }
0x1401   :  { %v2845_v18 = vpop.permute.xlu1 %2844 }
0x1402   :  { %v2853_v36 = vmul.f32 %v4369_v37, %v2845_v18  ;;  %v2874_v37 = vsub.f32 1.0, %v4381_v52 }
0x1404   :  { %2896 = vrot.lane.b32.xlu1 %v2853_v36, %s4440_s16 }
0x143e   :  { %v2891_v34 = vpop.permute.xlu0 %2890 }
0x143f   :  { %4032 = vmatprep.mubr.msk.f32.mxu0 %vm29_vm0, %v2891_v34 }
0x1442   :  { %v2895_v41 = vpop.permute.xlu0 %2894 }
0x1446   :  { %v2865_v26 = vpop.permute.xlu0 %2864 }
0x1447   :  { %v2867_v49 = vmul.f32 %v4381_v52, %v2865_v26 }
0x1449   :  { %2869 = vrot.lane.b32.xlu1 %v2867_v49, %s4438_s11 }
0x1472   :  { %v2893_v1 = vpop.permute.xlu1 %2892 }
0x1473   :  { %4033 = vmatmul.mubr.msk.f32.vlgmr.msra.gmra.mxu0 %vm29_vm0, %v2893_v1 }
0x1474   :  { %4035 = vmatprep.mubr.msk.f32.mxu0 %vm29_vm0, %v2895_v41  ;;  %4050 = vmatpush3.msra.mxu0 %v3150_v15  ;;  %v3483_v15 = vld [vmem:[%s5486_s4 + $0xf0] sm:$0xff] }
0x1475   :  { %4051 = vmatprep.subr.mxu0 %v4437_v25 }
0x1476   :  { %v2897_v54 = vpop.permute.xlu1 %2896 }
0x1477   :  { %4036 = vmatmul.mubr.msk.f32.gmra.mxu0 %vm29_vm0, %v2897_v54 }
0x1478   :  { %4057 = vmatprep.mubr.msk.f32.mxu0 %vm4439_vm3, %v4437_v25 }
0x14bb   :  { %v2870_v12 = vpop.permute.xlu1 %2869 }
0x14bc   :  { %v2872_v21 = vadd.f32 %v2870_v12, %v4818_v24 }
0x14be   :  { %4382 = vtanh.f32 %v2872_v21 }
0x14cb   :  { %v4383_v53 = vpop.eup %4382 }
0x14cc   :  { %2876 = vrot.lane.b32.xlu0 %v4383_v53, %s4441_s21 }
0x1533   :  { %v4034_v57 = vpop.f32.mrf.mxu0 }
0x1535   :  { %v2972_v51 = vpop.f32.mrf.mxu0 }
0x1536   :  { %v2989_v33 = vadd.f32 %v2972_v51, %v552_v27 }
0x1537   :  { %v4037_v44 = vpop.f32.mrf.mxu0 }
0x1538   :  { %4384 = vtanh.f32 %v2989_v33  ;;  %v3678_v38 = vmul.f32 -1.442695, %v2989_v33  ;;  %v3243_v33 = vld [vmem:[%s5486_s4 + $0xb8] sm:$0xff]  ;;  %v3242_v44 = vld [vmem:[%s5486_s4 + $0xb0] sm:$0xff] }
0x1539   :  { %v2981_v62 = vpop.f32.mrf.mxu0 }
0x153a   :  { %v2990_v35 = vadd.f32 %v2981_v62, %v564_v14  ;;  %v3241_v14 = vld [vmem:[%s5486_s4 + $0xa8] sm:$0xff]  ;;  %v3239_v62 = vld [vmem:[%s5486_s4 + $0x98] sm:$0xff] }
0x153c   :  { %4386 = vtanh.f32 %v2990_v35  ;;  %v3679_v22 = vmul.f32 -1.442695, %v2990_v35  ;;  %v3238_v35 = vld [vmem:[%s5486_s4 + $0x90] sm:$0xff] }
0x153d   :  { %4388 = vpow2.f32 %v3678_v38 }
0x153e   :  { %v2877_v55 = vpop.permute.xlu0 %2876  ;;  %4390 = vpow2.f32 %v3679_v22 }
0x153f   :  { %v2879_v4 = vmul.f32 %v2877_v55, %v2874_v37  ;;  %v3236_v55 = vld [vmem:[%s5486_s4 + $0x80] sm:$0xff] }
0x1541   :  { %v5354_v6 = vadd.f32 %v2882_v46, %v2879_v4 }
0x1543   :  { %v2992_v11 = vrot.slane %v5354_v6, 4  ;;  %v3141_v46 = vrot.slane %v5354_v6, 6 }
0x1545   :  { %v4385_v8 = vpop.eup %4384  ;;  %2993 = vrot.lane.b32.xlu1 %v2992_v11, %s4441_s21 }
0x1546   :  { %3085 = vrot.lane.b32.xlu0 %v4385_v8, %s4438_s11 }
0x1549   :  { %v4387_v19 = vpop.eup %4386 }
0x154a   :  { %3087 = vrot.lane.b32.xlu1 %v4387_v19, %s4438_s11  ;;  %v4389_v23 = vpop.eup %4388 }
0x154b   :  { %v3073_v58 = vadd.f32 1.0, %v4389_v23  ;;  %v4391_v32 = vpop.eup %4390  ;;  %v3681_v23 = vld [vmem:[%s5486_s4 + $0x78] ss:$0 sm:$0xff] }
0x154c   :  { %v3074_v40 = vadd.f32 1.0, %v4391_v32 }
0x154d   :  { %4392 = vrcp.f32 %v3073_v58 }
0x154e   :  { %4394 = vrcp.f32 %v3074_v40 }
0x155a   :  { %v4393_v5 = vpop.eup %4392 }
0x155b   :  { %v4395_v47 = vpop.eup %4394  ;;  %v3081_v42 = vmul.f32 %v4393_v5, %v5317_v45  ;;  %v3149_v45 = vld [vmem:[%s5486_s4 + $0x68] sm:$0xff] }
0x155c   :  { %v3082_v2 = vmul.f32 %v4395_v47, %v5322_v39  ;;  %v3148_v39 = vld [vmem:[%s5486_s4 + $0x60] sm:$0xff]  ;;  %4052 = vmatpush3.msra.mxu0 %v3149_v45  ;;  %v3686_v45 = vld [vmem:[%s5486_s4 + $0xe8] ss:$0 sm:$0xff] }
0x155d   :  { %4053 = vmatprep.subr.mxu0 %v4437_v25 }
0x155e   :  { %4054 = vmatpush3.msra.mxu0 %v3148_v39 }
0x155f   :  { %4055 = vmatprep.subr.mxu0 %v4437_v25 }
0x1560   :  { %4056 = vmatpush3.msra.mxu0 %v3147_v16 }
0x1561   :  { %4071 = vmatprep.subr.mxu0 %v4437_v25 }
0x15b7   :  { %v2994_v20 = vpop.permute.xlu1 %2993 }
0x15b8   :  { %v3086_v31 = vpop.permute.xlu0 %3085  ;;  %4047 = vmatmul.mubr.msk.f32.vlgmr.msra.gmra.mxu1 %vm29_vm0, %v2994_v20  ;;  %v3402_v20 = vld [vmem:[%s5486_s4 + $0xd8] sm:$0xff] }
0x15b9   :  { %v3091_v43 = vmul.f32 %v4393_v5, %v3086_v31  ;;  %4068 = vmatprep.mubr.msk.f32.mxu1 %vm4439_vm3, %v4437_v25  ;;  %4061 = vmatpush3.msra.mxu1 %v3243_v33  ;;  %v3401_v31 = vld [vmem:[%s5486_s4 + $0xd0] sm:$0xff] }
0x15ba   :  { %4062 = vmatprep.subr.mxu1 %v4437_v25 }
0x15bb   :  { %3095 = vrot.lane.b32.xlu0 %v3091_v43, %s4440_s16  ;;  %4063 = vmatpush3.msra.mxu1 %v3242_v44  ;;  %v3400_v43 = vld [vmem:[%s5486_s4 + $0xc8] sm:$0xff] }
0x15bc   :  { %v3088_v0 = vpop.permute.xlu1 %3087  ;;  %4064 = vmatprep.subr.mxu1 %v4437_v25 }
0x15bd   :  { %v3092_v50 = vmul.f32 %v4395_v47, %v3088_v0  ;;  %4065 = vmatpush3.msra.mxu1 %v3241_v14 }
0x15be   :  { %4066 = vmatprep.subr.mxu1 %v4437_v25 }
0x15bf   :  { %3097 = vrot.lane.b32.xlu1 %v3092_v50, %s4440_s16 }
0x162d   :  { %v3096_v17 = vpop.permute.xlu0 %3095 }
0x162e   :  { %v3101_v7 = vadd.f32 %v3096_v17, %v3081_v42  ;;  %v3685_v17 = vld [vmem:[%s5486_s4 + $0xc0] ss:$0 sm:$0xff] }
0x1630   :  { %4396 = vtanh.f32 %v3101_v7 }
0x1631   :  { %v3098_v3 = vpop.permute.xlu1 %3097 }
0x1632   :  { %v3102_v61 = vadd.f32 %v3098_v3, %v3082_v2 }
0x1634   :  { %4398 = vtanh.f32 %v3102_v61 }
0x163d   :  { %v4397_v9 = vpop.eup %4396 }
0x163e   :  { %3107 = vrot.lane.b32.xlu0 %v4397_v9, %s4438_s11  ;;  %v3485_v9 = vld [vmem:[%s5486_s4 + $0x100] sm:$0xff] }
0x1641   :  { %v4399_v13 = vpop.eup %4398 }
0x1642   :  { %3109 = vrot.lane.b32.xlu1 %v4399_v13, %s4438_s11  ;;  %v3484_v13 = vld [vmem:[%s5486_s4 + $0xf8] sm:$0xff] }
0x1678   :  { %v3063_v56 = vpop.f32.mrf.mxu1 }
0x1679   :  { %v3064_v18 = vadd.f32 %v5184_v59, %v3063_v56 }
0x167a   :  { %v4048_v36 = vpop.f32.mrf.mxu1 }
0x167b   :  { %v3116_v60 = vrot.slane %v3064_v18, 2  ;;  %v3688_v36 = vld [vmem:[%s5486_s4 + $0x110] ss:$0 sm:$0xff] }
0x167d   :  { %3125 = vrot.lane.b32.xlu0 %v3116_v60, %s4438_s11  ;;  %v3118_v59 = vadd.f32 %v3116_v60, %v4818_v24 }
0x167f   :  { %v3680_v54 = vmul.f32 -1.442695, %v3118_v59 }
0x1681   :  { %4400 = vpow2.f32 %v3680_v54 }
0x168e   :  { %v4401_v12 = vpop.eup %4400 }
0x168f   :  { %v3122_v21 = vadd.f32 1.0, %v4401_v12 }
0x1691   :  { %4402 = vrcp.f32 %v3122_v21 }
0x169e   :  { %v4403_v53 = vpop.eup %4402 }
0x169f   :  { %v3135_v4 = vsub.f32 1.0, %v4403_v53  ;;  %v3143_v8 = vmul.f32 %v4403_v53, %v3141_v46 }
0x16b0   :  { %v3108_v48 = vpop.permute.xlu0 %3107 }
0x16b1   :  { %v3113_v10 = vmul.f32 %v4393_v5, %v3108_v48  ;;  %v3403_v5 = vld [vmem:[%s5486_s4 + $0xe0] sm:$0xff] }
0x16b3   :  { %v3145_v34 = vmax.f32 %v3113_v10, 0.0 }
0x16b4   :  { %v3110_v28 = vpop.permute.xlu1 %3109 }
0x16b5   :  { %v3114_v41 = vmul.f32 %v4395_v47, %v3110_v28  ;;  %v3158_v26 = vrot.slane %v3145_v34, 3  ;;  %v3486_v47 = vld [vmem:[%s5486_s4 + $0x108] sm:$0xff] }
0x16b7   :  { %v3146_v52 = vmax.f32 %v3114_v41, 0.0 }
0x16b9   :  { %v3159_v49 = vrot.slane %v3146_v52, 2 }
0x16bb   :  { %v3161_v1 = vsel %vm3160_vm4, %v3159_v49, %v3158_v26 }
0x16bc   :  { %3162 = vrot.lane.b32.xlu1 %v3161_v1, %s4440_s16 }
0x16ef   :  { %v3126_v30 = vpop.permute.xlu0 %3125 }
0x16f0   :  { %v3128_v29 = vmul.f32 %v4403_v53, %v3126_v30 }
0x16f2   :  { %3130 = vrot.lane.b32.xlu0 %v3128_v29, %s4438_s11 }
0x172e   :  { %v3163_v57 = vpop.permute.xlu1 %3162 }
0x172f   :  { %4058 = vmatmul.mubr.msk.f32.vlgmr.msra.gmra.mxu0 %vm29_vm0, %v3163_v57 }
0x1730   :  { %4079 = vmatprep.mubr.msk.f32.mxu0 %vm4439_vm3, %v4437_v25  ;;  %4072 = vmatpush3.msra.mxu0 %v3239_v62 }
0x1731   :  { %4073 = vmatprep.subr.mxu0 %v4437_v25 }
0x1732   :  { %4074 = vmatpush3.msra.mxu0 %v3238_v35 }
0x1733   :  { %4075 = vmatprep.subr.mxu0 %v4437_v25 }
0x1734   :  { %4076 = vmatpush3.msra.mxu0 %v3237_v63 }
0x1735   :  { %4077 = vmatprep.subr.mxu0 %v4437_v25 }
0x1736   :  { %4078 = vmatpush3.msra.mxu0 %v3236_v55 }
0x1737   :  { %4093 = vmatprep.subr.mxu0 %v4437_v25 }
0x1764   :  { %v3131_v27 = vpop.permute.xlu0 %3130 }
0x1765   :  { %v3133_v51 = vadd.f32 %v3131_v27, %v4818_v24  ;;  %v3240_v24 = vld [vmem:[%s5486_s4 + $0xa0] sm:$0xff] }
0x1766   :  { %4067 = vmatpush3.msra.mxu1 %v3240_v24 }
0x1767   :  { %4404 = vtanh.f32 %v3133_v51  ;;  %4082 = vmatprep.subr.mxu1 %v4437_v25 }
0x1774   :  { %v4405_v37 = vpop.eup %4404 }
0x1775   :  { %3137 = vrot.lane.b32.xlu1 %v4405_v37, %s4441_s21 }
0x17e7   :  { %v3138_v11 = vpop.permute.xlu1 %3137 }
0x17e8   :  { %v3140_v19 = vmul.f32 %v3138_v11, %v3135_v4 }
0x17ea   :  { %v3144_v38 = vadd.f32 %v3143_v8, %v3140_v19 }
0x17ec   :  { %v3318_v22 = vrot.slane %v3144_v38, 6 }
0x17ee   :  { %3319 = vrot.lane.b32.xlu0 %v3318_v22, %s4441_s21 }
0x17ef   :  { %v3232_v58 = vpop.f32.mrf.mxu0 }
0x17f0   :  { %v3233_v32 = vadd.f32 %v3681_v23, %v3232_v58 }
0x17f1   :  { %v4059_v40 = vpop.f32.mrf.mxu0 }
0x17f2   :  { %4069 = vmatmul.mubr.msk.f32.vlgmr.msra.gmra.mxu1 %vm29_vm0, %v3233_v32 }
0x17f3   :  { %4090 = vmatprep.mubr.msk.f32.mxu1 %vm4439_vm3, %v4437_v25  ;;  %4083 = vmatpush3.msra.mxu1 %v3403_v5 }
0x17f4   :  { %4084 = vmatprep.subr.mxu1 %v4437_v25 }
0x17f5   :  { %4085 = vmatpush3.msra.mxu1 %v3402_v20 }
0x17f6   :  { %4086 = vmatprep.subr.mxu1 %v4437_v25 }
0x17f7   :  { %4087 = vmatpush3.msra.mxu1 %v3401_v31 }
0x17f8   :  { %4088 = vmatprep.subr.mxu1 %v4437_v25 }
0x17f9   :  { %4089 = vmatpush3.msra.mxu1 %v3400_v43 }
0x1860   :  { %v3320_v6 = vpop.permute.xlu0 %3319 }
0x1861   :  { %4080 = vmatmul.mubr.msk.f32.vlgmr.msra.gmra.mxu0 %vm29_vm0, %v3320_v6 }
0x1862   :  { %4101 = vmatprep.mubr.msk.f32.mxu0 %vm4439_vm3, %v4437_v25  ;;  %4094 = vmatpush3.msra.mxu0 %v3486_v47 }
0x1863   :  { %4095 = vmatprep.subr.mxu0 %v4437_v25 }
0x1864   :  { %4096 = vmatpush3.msra.mxu0 %v3485_v9 }
0x1865   :  { %4097 = vmatprep.subr.mxu0 %v4437_v25 }
0x1866   :  { %4098 = vmatpush3.msra.mxu0 %v3484_v13 }
0x1867   :  { %4099 = vmatprep.subr.mxu0 %v4437_v25 }
0x1868   :  { %4100 = vmatpush3.msra.mxu0 %v3483_v15 }
0x18b2   :  { %v3313_v0 = vpop.f32.mrf.mxu1 }
0x18b4   :  { %v4070_v50 = vpop.f32.mrf.mxu1 }
0x1921   :  { %v3389_v42 = vpop.f32.mrf.mxu0 }
0x1922   :  { %v3390_v7 = vadd.f32 %v3389_v42, %v3313_v0 }
0x1923   :  { %v4081_v2 = vpop.f32.mrf.mxu0 }
0x1924   :  { %v3398_v3 = vadd.f32 %v3685_v17, %v3390_v7 }
0x1926   :  { %v3399_v61 = vmax.f32 %v3398_v3, 0.0 }
0x1928   :  { %4091 = vmatmul.mubr.msk.f32.vlgmr.msra.gmra.mxu1 %vm29_vm0, %v3399_v61 }
0x19e8   :  { %v3478_v39 = vpop.f32.mrf.mxu1 }
0x19e9   :  { %v3479_v16 = vadd.f32 %v3686_v45, %v3478_v39 }
0x19ea   :  { %v4092_v56 = vpop.f32.mrf.mxu1 }
0x19eb   :  { %v3482_v18 = vmax.f32 %v3479_v16, 0.0 }
0x19ed   :  { %4102 = vmatmul.mubr.msk.f32.vlgmr.msra.gmra.mxu0 %vm29_vm0, %v3482_v18 }
0x1aad   :  { %v3561_v25 = vpop.f32.mrf.mxu0 }
0x1aae   :  { %v3562_v60 = vadd.f32 %v3688_v36, %v3561_v25 }
0x1aaf   :  { %v4103_v48 = vpop.f32.mrf.mxu0 }
0x1ab0   :  { %3566 = vst.msk [vmem:[#allocation3] sm:$0x3] %vm3565_vm5, %v3562_v60 }
0x1ab1   :  { %4426 = shalt.err (!%p4423_p4)
}
0x1ab2   :  { %3576 = dma.vmem_to_hbm [thread:$0]  %s3574_s6, 32, %s5487_s5, [#allocation4]  }
0x1ab3   :  { %4435 = dma.done.wait [#allocation4], 32  }
0x1ab4   :  { %4436 = vsyncadd [#allocation4], 4294967264 }
0x1ab5   :  { %3580 = vsyncpa [#allocation4], 1 }

</bundles_post_ra>
